<compile_context>
chip_gen: v7x
topology: tpu7x:2x2x1
jax: 0.10.0
libtpu: 0.0.40
codegen_flags: <defaults>
</compile_context>

<pallas_src>
import functools

import jax
import jax.numpy as jnp
from jax.experimental import pallas as pl
from jax.experimental.pallas import tpu as pltpu


_VMEM_LIMIT = 32 * 1024 * 1024  # safe on v5e/v6e (128 MiB phys) and v7x (64 MiB)


# ---------------------------------------------------------------------------
# Tiling helpers
# ---------------------------------------------------------------------------
def _round_up(x, m):
    return ((x + m - 1) // m) * m


def _conv_out(n, k, s):
    return (n - k) // s + 1


def _choose_m_tile(m):
    """(padded_M, TM): rows padded to 16 (bf16 packing); >=2 blocks when possible
    (v7x megacore); 256/512-row tiles for large M (v5e/v6e roofline)."""
    mp = _round_up(max(m, 1), 16)
    if mp <= 32:
        return mp, mp
    if mp <= 1024:
        tm = _round_up((mp + 1) // 2, 16)
        return 2 * tm, tm
    tm = 512 if mp >= 8192 else 256
    return _round_up(mp, tm), tm


def _choose_k_tile(kp):
    """Largest divisor of kp that is a multiple of 128 and <= 1024."""
    best = 128
    t = 128
    while t <= min(kp, 1024):
        if kp % t == 0:
            best = t
        t += 128
    return best


def _choose_b_tile(b):
    """(padded_B, TB) for the fused tail kernel's batch grid."""
    bp = _round_up(max(b, 1), 16)
    if bp <= 16:
        return bp, bp
    if bp <= 256:
        tb = _round_up((bp + 1) // 2, 16)
        return 2 * tb, tb
    return _round_up(bp, 128), 128


# ---------------------------------------------------------------------------
# Kernel A: conv1 as a tiled GEMM   out = relu(cols1 @ W + b)
# ---------------------------------------------------------------------------
def _conv1_gemm_kernel(x_ref, w_ref, b_ref, o_ref, acc_ref):
    k = pl.program_id(1)

    @pl.when(k == 0)
    def _():
        acc_ref[...] = jnp.zeros_like(acc_ref)

    acc_ref[...] += jnp.dot(x_ref[...], w_ref[...],
                            preferred_element_type=jnp.float32)

    @pl.when(k == pl.num_programs(1) - 1)
    def _():
        o_ref[...] = jnp.maximum(acc_ref[...] + b_ref[...], 0.0).astype(o_ref.dtype)


def conv1_gemm(cols, w_p, b_p, *, tm, tk):
    """cols: (Mp, Kp) bf16; w_p: (Kp, 128) bf16; b_p: (1, 128) f32."""
    mp, kp = cols.shape
    np_ = w_p.shape[1]
    grid = (mp // tm, kp // tk)          # 2-D grid only (no dead N axis)
    return pl.pallas_call(
        _conv1_gemm_kernel,
        out_shape=jax.ShapeDtypeStruct((mp, np_), jnp.bfloat16),
        grid=grid,
        in_specs=[
            pl.BlockSpec((tm, tk), lambda i, k: (i, k)),
            pl.BlockSpec((tk, np_), lambda i, k: (k, 0)),
            pl.BlockSpec((1, np_), lambda i, k: (0, 0)),
        ],
        out_specs=pl.BlockSpec((tm, np_), lambda i, k: (i, 0)),
        scratch_shapes=[pltpu.VMEM((tm, np_), jnp.float32)],
        compiler_params=pltpu.CompilerParams(
            dimension_semantics=("parallel", "arbitrary"),
            vmem_limit_bytes=_VMEM_LIMIT),
    )(cols, w_p, b_p)


# ---------------------------------------------------------------------------
# Kernel B: fused tail   conv2 -> conv3 -> fc1 -> value, all in VMEM
#   cols2 rows are ordered (conv2 output position, batch) so every per-position
#   block is a contiguous 2-D slice (no strided access / reshape in-kernel).
# ---------------------------------------------------------------------------
def _tail_kernel(cols2_ref, w2_ref, b2_ref, w3_ref, b3_ref,
                 w1_ref, b1_ref, wv_ref, bv_ref, o_ref,
                 *, S2, Wo2, S3, Wo3, K3):
    # conv2: one (TB, 512) x (512, 64) matmul per conv2 output position.
    w2 = w2_ref[...]
    b2 = b2_ref[...]
    h2 = []
    for p2 in range(S2):
        acc = jnp.dot(cols2_ref[p2], w2, preferred_element_type=jnp.float32)
        h2.append(jnp.maximum(acc + b2, 0.0).astype(jnp.bfloat16))

    # conv3 (stride 1) + NCHW-flatten + fc1 folded into per-position accumulation.
    b3 = b3_ref[...]
    hid = None
    for p3 in range(S3):
        i3, j3 = divmod(p3, Wo3)
        acc3 = None
        for t in range(K3 * K3):
            kh, kw = divmod(t, K3)
            p2 = (i3 + kh) * Wo2 + (j3 + kw)
            term = jnp.dot(h2[p2], w3_ref[t], preferred_element_type=jnp.float32)
            acc3 = term if acc3 is None else acc3 + term
        h3 = jnp.maximum(acc3 + b3, 0.0).astype(jnp.bfloat16)        # (TB, 64)
        term1 = jnp.dot(h3, w1_ref[p3], preferred_element_type=jnp.float32)
        hid = term1 if hid is None else hid + term1

    hid = jnp.maximum(hid + b1_ref[...], 0.0).astype(jnp.bfloat16)   # relu(fc1)
    o_ref[...] = jnp.dot(hid, wv_ref[...],
                         preferred_element_type=jnp.float32) + bv_ref[...]


def tail_fused(cols2, packed, *, S2, Wo2, S3, Wo3, tb):
    """cols2: (S2, Bp, 512) bf16 (rows ordered position-major, batch-minor)."""
    _, bp, k2 = cols2.shape
    nvp = packed["value_w"].shape[1]
    kernel = functools.partial(_tail_kernel, S2=S2, Wo2=Wo2, S3=S3, Wo3=Wo3, K3=3)

    def full(shape):
        return pl.BlockSpec(shape, lambda i, _s=shape: (0,) * len(_s))

    return pl.pallas_call(
        kernel,
        out_shape=jax.ShapeDtypeStruct((bp, nvp), jnp.float32),
        grid=(bp // tb,),
        in_specs=[
            pl.BlockSpec((S2, tb, k2), lambda i: (0, i, 0)),
            full(packed["c2_w"].shape), full(packed["c2_b"].shape),
            full(packed["c3_w"].shape), full(packed["c3_b"].shape),
            full(packed["fc1_w"].shape), full(packed["fc1_b"].shape),
            full(packed["value_w"].shape), full(packed["value_b"].shape),
        ],
        out_specs=pl.BlockSpec((tb, nvp), lambda i: (i, 0)),
        compiler_params=pltpu.CompilerParams(
            dimension_semantics=("parallel",),
            vmem_limit_bytes=_VMEM_LIMIT),
    )(cols2, packed["c2_w"], packed["c2_b"], packed["c3_w"], packed["c3_b"],
      packed["fc1_w"], packed["fc1_b"], packed["value_w"], packed["value_b"])


# ---------------------------------------------------------------------------
# Parameter init (PyTorch layout + uniform(-1/sqrt(fan_in), +1/sqrt(fan_in)))
# ---------------------------------------------------------------------------
def _init_conv(key, cout, cin, k):
    k1, k2 = jax.random.split(key)
    bound = 1.0 / float(cin * k * k) ** 0.5
    w = jax.random.uniform(k1, (cout, cin, k, k), jnp.float32, -bound, bound)
    b = jax.random.uniform(k2, (cout,), jnp.float32, -bound, bound)
    return w, b


def _init_fc(key, fan_in, fan_out):
    k1, k2 = jax.random.split(key)
    bound = 1.0 / float(fan_in) ** 0.5
    w = jax.random.uniform(k1, (fan_out, fan_in), jnp.float32, -bound, bound)
    b = jax.random.uniform(k2, (fan_out,), jnp.float32, -bound, bound)
    return w, b


def init_critic_params(key, in_channels, height, width):
    keys = jax.random.split(key, 5)
    p = {}
    p["cnn1_w"], p["cnn1_b"] = _init_conv(keys[0], 32, in_channels, 8)
    p["cnn2_w"], p["cnn2_b"] = _init_conv(keys[1], 64, 32, 4)
    p["cnn3_w"], p["cnn3_b"] = _init_conv(keys[2], 64, 64, 3)
    h1, w1 = _conv_out(height, 8, 4), _conv_out(width, 8, 4)
    h2, w2 = _conv_out(h1, 4, 2), _conv_out(w1, 4, 2)
    h3, w3 = _conv_out(h2, 3, 1), _conv_out(w2, 3, 1)
    n_flatten = 64 * h3 * w3
    p["fc1_w"], p["fc1_b"] = _init_fc(keys[3], n_flatten, 512)
    p["value_w"], p["value_b"] = _init_fc(keys[4], 512, 1)
    # TODO(synk): fc2 / q (getQ path with one-hot action concat) not exercised by
    # forward(x, action=None); only the V path is implemented here.
    return p


def prepare_params(p, in_channels, height, width):
    """One-time packing: GEMM layouts, tap/position grouping, padding, bf16 casts."""
    h1, w1 = _conv_out(height, 8, 4), _conv_out(width, 8, 4)
    h2, w2 = _conv_out(h1, 4, 2), _conv_out(w1, 4, 2)
    h3, w3 = _conv_out(h2, 3, 1), _conv_out(w2, 3, 1)
    s3 = h3 * w3

    packed = {}
    # conv1 GEMM weight: rows (kh, kw, cin), output padded to 128 lanes.
    k1 = 8 * 8 * in_channels
    k1p = _round_up(k1, 128)
    wm = jnp.transpose(p["cnn1_w"], (2, 3, 1, 0)).reshape(k1, 32)
    packed["c1_w"] = (jnp.zeros((k1p, 128), jnp.bfloat16)
                      .at[:k1, :32].set(wm.astype(jnp.bfloat16)))
    packed["c1_b"] = jnp.zeros((1, 128), jnp.float32).at[0, :32].set(p["cnn1_b"])

    # conv2 (used inside the fused tail): (4*4*32, 64), rows (kh, kw, cin).
    packed["c2_w"] = jnp.transpose(p["cnn2_w"], (2, 3, 1, 0)).reshape(512, 64).astype(jnp.bfloat16)
    packed["c2_b"] = p["cnn2_b"].reshape(1, 64).astype(jnp.float32)

    # conv3: per-tap (kh, kw) weight blocks (9, cin=64, cout=64).
    packed["c3_w"] = jnp.transpose(p["cnn3_w"], (2, 3, 1, 0)).reshape(9, 64, 64).astype(jnp.bfloat16)
    packed["c3_b"] = p["cnn3_b"].reshape(1, 64).astype(jnp.float32)

    # fc1: PyTorch flattens NCHW -> feature index = c*S3 + p3.  Regroup into
    # per-spatial-position blocks (S3, 64, 512) so the flatten never materializes.
    w1fc = p["fc1_w"].reshape(512, 64, s3)                       # [n, c, p3]
    packed["fc1_w"] = jnp.transpose(w1fc, (2, 1, 0)).astype(jnp.bfloat16)   # (S3, 64, 512)
    packed["fc1_b"] = p["fc1_b"].reshape(1, 512).astype(jnp.float32)

    # value head: (512, 1) padded to 128 output lanes (lane-dense store).
    packed["value_w"] = (jnp.zeros((512, 128), jnp.bfloat16)
                         .at[:, :1].set(p["value_w"].T.astype(jnp.bfloat16)))
    packed["value_b"] = jnp.zeros((1, 128), jnp.float32).at[0, :1].set(p["value_b"])
    return packed


# ---------------------------------------------------------------------------
# Critic.forward(x, action=None) == value(relu(fc1(flatten(conv stack(x)))))
# ---------------------------------------------------------------------------
def critic_forward(x, packed):
    """x: (B, C, H, W) f32 (PyTorch layout). Returns (B, 1) f32 value."""
    B, C, H, W = x.shape
    ho1, wo1 = _conv_out(H, 8, 4), _conv_out(W, 8, 4)
    ho2, wo2 = _conv_out(ho1, 4, 2), _conv_out(wo1, 4, 2)
    ho3, wo3 = _conv_out(ho2, 3, 1), _conv_out(wo2, 3, 1)
    s1, s2, s3 = ho1 * wo1, ho2 * wo2, ho3 * wo3

    xh = jnp.transpose(x, (0, 2, 3, 1)).astype(jnp.bfloat16)     # NCHW -> NHWC once

    # ---- conv1: im2col (one fused XLA materialization, pad fused in) + GEMM ----
    k1 = 8 * 8 * C
    k1p = packed["c1_w"].shape[0]
    m1 = B * s1
    m1p, tm = _choose_m_tile(m1)
    tk = _choose_k_tile(k1p)
    patches = [xh[:, kh:kh + ho1 * 4:4, kw:kw + wo1 * 4:4, :]
               for kh in range(8) for kw in range(8)]
    cols1 = jnp.concatenate(patches, axis=-1).reshape(m1, k1)
    cols1 = jnp.pad(cols1, ((0, m1p - m1), (0, k1p - k1)))
    h1p = conv1_gemm(cols1, packed["c1_w"], packed["c1_b"], tm=tm, tk=tk)  # (m1p, 128) bf16

    # ---- conv2 im2col with (position, batch) row order; feeds the fused tail ----
    h1 = h1p[:m1, :32].reshape(B, ho1, wo1, 32)
    patches2 = [h1[:, kh:kh + ho2 * 2:2, kw:kw + wo2 * 2:2, :]
                for kh in range(4) for kw in range(4)]
    cols2 = jnp.concatenate(patches2, axis=-1).reshape(B, s2, 512)
    cols2 = jnp.transpose(cols2, (1, 0, 2))                      # (S2, B, 512)
    bp, tb = _choose_b_tile(B)
    cols2 = jnp.pad(cols2, ((0, 0), (0, bp - B), (0, 0)))

    # ---- fused tail: conv2 + conv3 + fc1 + value in a single pallas_call ----
    out = tail_fused(cols2, packed, S2=s2, Wo2=wo2, S3=s3, Wo3=wo3, tb=tb)
    return out[:B, :1]                                           # (B, 1) f32


if __name__ == "__main__":
    key = jax.random.PRNGKey(0)
    k_params, k_x = jax.random.split(key)

    # Smallest conv-valid input: conv1(8,s4)->8x8, conv2(4,s2)->3x3, conv3(3,s1)->1x1,
    # flatten = 64.
    B, C, H, W = 2, 4, 36, 36
    params = init_critic_params(k_params, C, H, W)
    packed = prepare_params(params, C, H, W)
    x = jax.random.normal(k_x, (B, C, H, W), dtype=jnp.float32)

    fwd = jax.jit(critic_forward)
    v = fwd(x, packed)
    jax.block_until_ready(v)
    assert v.shape == (B, 1), v.shape
    assert bool(jnp.all(jnp.isfinite(v))), "non-finite output"
    print("KERNEL_OK")
</pallas_src>

<mosaic_0001>
module attributes {stable_mosaic.version = 11 : i64} {
  func.func @_conv1_gemm_kernel(%arg0: i32, %arg1: i32, %arg2: memref<64x256xbf16, #tpu.memory_space<vmem>>, %arg3: memref<256x128xbf16, #tpu.memory_space<vmem>>, %arg4: memref<1x128xf32, #tpu.memory_space<vmem>>, %arg5: memref<64x128xbf16, #tpu.memory_space<vmem>>, %arg6: memref<64x128xf32, #tpu.memory_space<vmem>>) attributes {dimension_semantics = [#tpu.dimension_semantics<parallel>, #tpu.dimension_semantics<arbitrary>], iteration_bounds = array<i64: 2, 1>, scalar_prefetch = 0 : i64, scratch_operands = 1 : i64, tpu.core_type = #tpu.core_type<tc>, window_params = [{transform_indices = @transform_0, window_bounds = array<i64: 64, 256>}, {transform_indices = @transform_1, window_bounds = array<i64: 256, 128>}, {pipeline_mode = #tpu.pipeline_mode<synchronous>, transform_indices = @transform_2, window_bounds = array<i64: 1, 128>}, {transform_indices = @transform_3, window_bounds = array<i64: 64, 128>}]} {
    %c0_i32 = arith.constant 0 : i32
    %0 = arith.cmpi eq, %arg1, %c0_i32 : i32
    %1 = arith.extui %0 : i1 to i32
    %c0_i32_0 = arith.constant 0 : i32
    %2 = arith.cmpi ne, %1, %c0_i32_0 : i32
    scf.if %2 {
      %cst_10 = arith.constant 0.000000e+00 : f32
      %12 = vector.broadcast %cst_10 : f32 to vector<64x128xf32>
      %c0_11 = arith.constant 0 : index
      %c0_12 = arith.constant 0 : index
      %13 = vector.load %arg6[%c0_11, %c0_12] : memref<64x128xf32, #tpu.memory_space<vmem>>, vector<64x128xf32>
      tpu.vector_store %arg6[%c0_11, %c0_12], %12 {strides = array<i32>} : memref<64x128xf32, #tpu.memory_space<vmem>>, vector<64x128xf32>,
    } else {
    }
    %c0 = arith.constant 0 : index
    %c0_1 = arith.constant 0 : index
    %3 = vector.load %arg6[%c0, %c0_1] : memref<64x128xf32, #tpu.memory_space<vmem>>, vector<64x128xf32>
    %c0_2 = arith.constant 0 : index
    %c0_3 = arith.constant 0 : index
    %4 = vector.load %arg2[%c0_2, %c0_3] : memref<64x256xbf16, #tpu.memory_space<vmem>>, vector<64x256xbf16>
    %c0_4 = arith.constant 0 : index
    %c0_5 = arith.constant 0 : index
    %5 = vector.load %arg3[%c0_4, %c0_5] : memref<256x128xbf16, #tpu.memory_space<vmem>>, vector<256x128xbf16>
    %cst = arith.constant dense<0.000000e+00> : vector<64x128xf32>
    %6 = tpu.matmul %4, %5, %cst {dimension_numbers = #tpu.dot_dimension_numbers<[1], [0], [0], [1], [0, 0, 1, 1], [], []>} : vector<64x256xbf16>, vector<256x128xbf16>, vector<64x128xf32> -> vector<64x128xf32>
    %7 = arith.addf %3, %6 : vector<64x128xf32>
    %c0_6 = arith.constant 0 : index
    %c0_7 = arith.constant 0 : index
    %8 = vector.load %arg6[%c0_6, %c0_7] : memref<64x128xf32, #tpu.memory_space<vmem>>, vector<64x128xf32>
    tpu.vector_store %arg6[%c0_6, %c0_7], %7 {strides = array<i32>} : memref<64x128xf32, #tpu.memory_space<vmem>>, vector<64x128xf32>,
    %c0_i32_8 = arith.constant 0 : i32
    %9 = arith.cmpi eq, %arg1, %c0_i32_8 : i32
    %10 = arith.extui %9 : i1 to i32
    %c0_i32_9 = arith.constant 0 : i32
    %11 = arith.cmpi ne, %10, %c0_i32_9 : i32
    scf.if %11 {
      %c0_10 = arith.constant 0 : index
      %c0_11 = arith.constant 0 : index
      %12 = vector.load %arg6[%c0_10, %c0_11] : memref<64x128xf32, #tpu.memory_space<vmem>>, vector<64x128xf32>
      %c0_12 = arith.constant 0 : index
      %c0_13 = arith.constant 0 : index
      %13 = vector.load %arg4[%c0_12, %c0_13] : memref<1x128xf32, #tpu.memory_space<vmem>>, vector<1x128xf32>
      %14 = vector.broadcast %13 : vector<1x128xf32> to vector<64x128xf32>
      %15 = arith.addf %12, %14 : vector<64x128xf32>
      %cst_14 = arith.constant 0.000000e+00 : f32
      %16 = vector.broadcast %cst_14 : f32 to vector<64x128xf32>
      %17 = arith.maximumf %15, %16 : vector<64x128xf32>
      %18 = arith.truncf %17 : vector<64x128xf32> to vector<64x128xbf16>
      %c0_15 = arith.constant 0 : index
      %c0_16 = arith.constant 0 : index
      %19 = vector.load %arg5[%c0_15, %c0_16] : memref<64x128xbf16, #tpu.memory_space<vmem>>, vector<64x128xbf16>
      tpu.vector_store %arg5[%c0_15, %c0_16], %18 {strides = array<i32>} : memref<64x128xbf16, #tpu.memory_space<vmem>>, vector<64x128xbf16>,
    } else {
    }
    return
  }
  func.func @transform_0(%arg0: i32, %arg1: i32) -> (i32, i32) {
    %c0_i32 = arith.constant 0 : i32
    return %arg0, %arg1 : i32, i32
  }
  func.func @transform_1(%arg0: i32, %arg1: i32) -> (i32, i32) {
    %c0_i32 = arith.constant 0 : i32
    %c0_i32_0 = arith.constant 0 : i32
    return %arg1, %c0_i32 : i32, i32
  }
  func.func @transform_2(%arg0: i32, %arg1: i32) -> (i32, i32) {
    %c0_i32 = arith.constant 0 : i32
    %c0_i32_0 = arith.constant 0 : i32
    %c0_i32_1 = arith.constant 0 : i32
    return %c0_i32, %c0_i32_0 : i32, i32
  }
  func.func @transform_3(%arg0: i32, %arg1: i32) -> (i32, i32) {
    %c0_i32 = arith.constant 0 : i32
    %c0_i32_0 = arith.constant 0 : i32
    return %arg0, %c0_i32 : i32, i32
  }
}

module attributes {stable_mosaic.version = 11 : i64} {
  func.func @_tail_kernel(%arg0: i32, %arg1: memref<9x16x512xbf16, #tpu.memory_space<vmem>>, %arg2: memref<512x64xbf16, #tpu.memory_space<vmem>>, %arg3: memref<1x64xf32, #tpu.memory_space<vmem>>, %arg4: memref<9x64x64xbf16, #tpu.memory_space<vmem>>, %arg5: memref<1x64xf32, #tpu.memory_space<vmem>>, %arg6: memref<1x64x512xbf16, #tpu.memory_space<vmem>>, %arg7: memref<1x512xf32, #tpu.memory_space<vmem>>, %arg8: memref<512x128xbf16, #tpu.memory_space<vmem>>, %arg9: memref<1x128xf32, #tpu.memory_space<vmem>>, %arg10: memref<16x128xf32, #tpu.memory_space<vmem>>) attributes {dimension_semantics = [#tpu.dimension_semantics<parallel>], iteration_bounds = array<i64: 1>, scalar_prefetch = 0 : i64, scratch_operands = 0 : i64, tpu.core_type = #tpu.core_type<tc>, window_params = [{transform_indices = @transform_0, window_bounds = array<i64: 9, 16, 512>}, {pipeline_mode = #tpu.pipeline_mode<synchronous>, transform_indices = @transform_1, window_bounds = array<i64: 512, 64>}, {pipeline_mode = #tpu.pipeline_mode<synchronous>, transform_indices = @transform_2, window_bounds = array<i64: 1, 64>}, {pipeline_mode = #tpu.pipeline_mode<synchronous>, transform_indices = @transform_3, window_bounds = array<i64: 9, 64, 64>}, {pipeline_mode = #tpu.pipeline_mode<synchronous>, transform_indices = @transform_4, window_bounds = array<i64: 1, 64>}, {pipeline_mode = #tpu.pipeline_mode<synchronous>, transform_indices = @transform_5, window_bounds = array<i64: 1, 64, 512>}, {pipeline_mode = #tpu.pipeline_mode<synchronous>, transform_indices = @transform_6, window_bounds = array<i64: 1, 512>}, {pipeline_mode = #tpu.pipeline_mode<synchronous>, transform_indices = @transform_7, window_bounds = array<i64: 512, 128>}, {pipeline_mode = #tpu.pipeline_mode<synchronous>, transform_indices = @transform_8, window_bounds = array<i64: 1, 128>}, {transform_indices = @transform_9, window_bounds = array<i64: 16, 128>}]} {
    %c0 = arith.constant 0 : index
    %c0_0 = arith.constant 0 : index
    %0 = vector.load %arg2[%c0, %c0_0] : memref<512x64xbf16, #tpu.memory_space<vmem>>, vector<512x64xbf16>
    %c0_1 = arith.constant 0 : index
    %c0_2 = arith.constant 0 : index
    %1 = vector.load %arg3[%c0_1, %c0_2] : memref<1x64xf32, #tpu.memory_space<vmem>>, vector<1x64xf32>
    %c0_3 = arith.constant 0 : index
    %c0_4 = arith.constant 0 : index
    %c0_5 = arith.constant 0 : index
    %2 = vector.load %arg1[%c0_3, %c0_4, %c0_5] : memref<9x16x512xbf16, #tpu.memory_space<vmem>>, vector<1x16x512xbf16>
    %3 = vector.shape_cast %2 : vector<1x16x512xbf16> to vector<16x512xbf16>
    %cst = arith.constant dense<0.000000e+00> : vector<16x64xf32>
    %4 = tpu.matmul %3, %0, %cst {dimension_numbers = #tpu.dot_dimension_numbers<[1], [0], [0], [1], [0, 0, 1, 1], [], []>} : vector<16x512xbf16>, vector<512x64xbf16>, vector<16x64xf32> -> vector<16x64xf32>
    %5 = vector.broadcast %1 : vector<1x64xf32> to vector<16x64xf32>
    %6 = arith.addf %4, %5 : vector<16x64xf32>
    %cst_6 = arith.constant 0.000000e+00 : f32
    %7 = vector.broadcast %cst_6 : f32 to vector<16x64xf32>
    %8 = arith.maximumf %6, %7 : vector<16x64xf32>
    %9 = arith.truncf %8 : vector<16x64xf32> to vector<16x64xbf16>
    %c1 = arith.constant 1 : index
    %c0_7 = arith.constant 0 : index
    %c0_8 = arith.constant 0 : index
    %10 = vector.load %arg1[%c1, %c0_7, %c0_8] : memref<9x16x512xbf16, #tpu.memory_space<vmem>>, vector<1x16x512xbf16>
    %11 = vector.shape_cast %10 : vector<1x16x512xbf16> to vector<16x512xbf16>
    %cst_9 = arith.constant dense<0.000000e+00> : vector<16x64xf32>
    %12 = tpu.matmul %11, %0, %cst_9 {dimension_numbers = #tpu.dot_dimension_numbers<[1], [0], [0], [1], [0, 0, 1, 1], [], []>} : vector<16x512xbf16>, vector<512x64xbf16>, vector<16x64xf32> -> vector<16x64xf32>
    %13 = vector.broadcast %1 : vector<1x64xf32> to vector<16x64xf32>
    %14 = arith.addf %12, %13 : vector<16x64xf32>
    %cst_10 = arith.constant 0.000000e+00 : f32
    %15 = vector.broadcast %cst_10 : f32 to vector<16x64xf32>
    %16 = arith.maximumf %14, %15 : vector<16x64xf32>
    %17 = arith.truncf %16 : vector<16x64xf32> to vector<16x64xbf16>
    %c2 = arith.constant 2 : index
    %c0_11 = arith.constant 0 : index
    %c0_12 = arith.constant 0 : index
    %18 = vector.load %arg1[%c2, %c0_11, %c0_12] : memref<9x16x512xbf16, #tpu.memory_space<vmem>>, vector<1x16x512xbf16>
    %19 = vector.shape_cast %18 : vector<1x16x512xbf16> to vector<16x512xbf16>
    %cst_13 = arith.constant dense<0.000000e+00> : vector<16x64xf32>
    %20 = tpu.matmul %19, %0, %cst_13 {dimension_numbers = #tpu.dot_dimension_numbers<[1], [0], [0], [1], [0, 0, 1, 1], [], []>} : vector<16x512xbf16>, vector<512x64xbf16>, vector<16x64xf32> -> vector<16x64xf32>
    %21 = vector.broadcast %1 : vector<1x64xf32> to vector<16x64xf32>
    %22 = arith.addf %20, %21 : vector<16x64xf32>
    %cst_14 = arith.constant 0.000000e+00 : f32
    %23 = vector.broadcast %cst_14 : f32 to vector<16x64xf32>
    %24 = arith.maximumf %22, %23 : vector<16x64xf32>
    %25 = arith.truncf %24 : vector<16x64xf32> to vector<16x64xbf16>
    %c3 = arith.constant 3 : index
    %c0_15 = arith.constant 0 : index
    %c0_16 = arith.constant 0 : index
    %26 = vector.load %arg1[%c3, %c0_15, %c0_16] : memref<9x16x512xbf16, #tpu.memory_space<vmem>>, vector<1x16x512xbf16>
    %27 = vector.shape_cast %26 : vector<1x16x512xbf16> to vector<16x512xbf16>
    %cst_17 = arith.constant dense<0.000000e+00> : vector<16x64xf32>
    %28 = tpu.matmul %27, %0, %cst_17 {dimension_numbers = #tpu.dot_dimension_numbers<[1], [0], [0], [1], [0, 0, 1, 1], [], []>} : vector<16x512xbf16>, vector<512x64xbf16>, vector<16x64xf32> -> vector<16x64xf32>
    %29 = vector.broadcast %1 : vector<1x64xf32> to vector<16x64xf32>
    %30 = arith.addf %28, %29 : vector<16x64xf32>
    %cst_18 = arith.constant 0.000000e+00 : f32
    %31 = vector.broadcast %cst_18 : f32 to vector<16x64xf32>
    %32 = arith.maximumf %30, %31 : vector<16x64xf32>
    %33 = arith.truncf %32 : vector<16x64xf32> to vector<16x64xbf16>
    %c4 = arith.constant 4 : index
    %c0_19 = arith.constant 0 : index
    %c0_20 = arith.constant 0 : index
    %34 = vector.load %arg1[%c4, %c0_19, %c0_20] : memref<9x16x512xbf16, #tpu.memory_space<vmem>>, vector<1x16x512xbf16>
    %35 = vector.shape_cast %34 : vector<1x16x512xbf16> to vector<16x512xbf16>
    %cst_21 = arith.constant dense<0.000000e+00> : vector<16x64xf32>
    %36 = tpu.matmul %35, %0, %cst_21 {dimension_numbers = #tpu.dot_dimension_numbers<[1], [0], [0], [1], [0, 0, 1, 1], [], []>} : vector<16x512xbf16>, vector<512x64xbf16>, vector<16x64xf32> -> vector<16x64xf32>
    %37 = vector.broadcast %1 : vector<1x64xf32> to vector<16x64xf32>
    %38 = arith.addf %36, %37 : vector<16x64xf32>
    %cst_22 = arith.constant 0.000000e+00 : f32
    %39 = vector.broadcast %cst_22 : f32 to vector<16x64xf32>
    %40 = arith.maximumf %38, %39 : vector<16x64xf32>
    %41 = arith.truncf %40 : vector<16x64xf32> to vector<16x64xbf16>
    %c5 = arith.constant 5 : index
    %c0_23 = arith.constant 0 : index
    %c0_24 = arith.constant 0 : index
    %42 = vector.load %arg1[%c5, %c0_23, %c0_24] : memref<9x16x512xbf16, #tpu.memory_space<vmem>>, vector<1x16x512xbf16>
    %43 = vector.shape_cast %42 : vector<1x16x512xbf16> to vector<16x512xbf16>
    %cst_25 = arith.constant dense<0.000000e+00> : vector<16x64xf32>
    %44 = tpu.matmul %43, %0, %cst_25 {dimension_numbers = #tpu.dot_dimension_numbers<[1], [0], [0], [1], [0, 0, 1, 1], [], []>} : vector<16x512xbf16>, vector<512x64xbf16>, vector<16x64xf32> -> vector<16x64xf32>
    %45 = vector.broadcast %1 : vector<1x64xf32> to vector<16x64xf32>
    %46 = arith.addf %44, %45 : vector<16x64xf32>
    %cst_26 = arith.constant 0.000000e+00 : f32
    %47 = vector.broadcast %cst_26 : f32 to vector<16x64xf32>
    %48 = arith.maximumf %46, %47 : vector<16x64xf32>
    %49 = arith.truncf %48 : vector<16x64xf32> to vector<16x64xbf16>
    %c6 = arith.constant 6 : index
    %c0_27 = arith.constant 0 : index
    %c0_28 = arith.constant 0 : index
    %50 = vector.load %arg1[%c6, %c0_27, %c0_28] : memref<9x16x512xbf16, #tpu.memory_space<vmem>>, vector<1x16x512xbf16>
    %51 = vector.shape_cast %50 : vector<1x16x512xbf16> to vector<16x512xbf16>
    %cst_29 = arith.constant dense<0.000000e+00> : vector<16x64xf32>
    %52 = tpu.matmul %51, %0, %cst_29 {dimension_numbers = #tpu.dot_dimension_numbers<[1], [0], [0], [1], [0, 0, 1, 1], [], []>} : vector<16x512xbf16>, vector<512x64xbf16>, vector<16x64xf32> -> vector<16x64xf32>
    %53 = vector.broadcast %1 : vector<1x64xf32> to vector<16x64xf32>
    %54 = arith.addf %52, %53 : vector<16x64xf32>
    %cst_30 = arith.constant 0.000000e+00 : f32
    %55 = vector.broadcast %cst_30 : f32 to vector<16x64xf32>
    %56 = arith.maximumf %54, %55 : vector<16x64xf32>
    %57 = arith.truncf %56 : vector<16x64xf32> to vector<16x64xbf16>
    %c7 = arith.constant 7 : index
    %c0_31 = arith.constant 0 : index
    %c0_32 = arith.constant 0 : index
    %58 = vector.load %arg1[%c7, %c0_31, %c0_32] : memref<9x16x512xbf16, #tpu.memory_space<vmem>>, vector<1x16x512xbf16>
    %59 = vector.shape_cast %58 : vector<1x16x512xbf16> to vector<16x512xbf16>
    %cst_33 = arith.constant dense<0.000000e+00> : vector<16x64xf32>
    %60 = tpu.matmul %59, %0, %cst_33 {dimension_numbers = #tpu.dot_dimension_numbers<[1], [0], [0], [1], [0, 0, 1, 1], [], []>} : vector<16x512xbf16>, vector<512x64xbf16>, vector<16x64xf32> -> vector<16x64xf32>
    %61 = vector.broadcast %1 : vector<1x64xf32> to vector<16x64xf32>
    %62 = arith.addf %60, %61 : vector<16x64xf32>
    %cst_34 = arith.constant 0.000000e+00 : f32
    %63 = vector.broadcast %cst_34 : f32 to vector<16x64xf32>
    %64 = arith.maximumf %62, %63 : vector<16x64xf32>
    %65 = arith.truncf %64 : vector<16x64xf32> to vector<16x64xbf16>
    %c8 = arith.constant 8 : index
    %c0_35 = arith.constant 0 : index
    %c0_36 = arith.constant 0 : index
    %66 = vector.load %arg1[%c8, %c0_35, %c0_36] : memref<9x16x512xbf16, #tpu.memory_space<vmem>>, vector<1x16x512xbf16>
    %67 = vector.shape_cast %66 : vector<1x16x512xbf16> to vector<16x512xbf16>
    %cst_37 = arith.constant dense<0.000000e+00> : vector<16x64xf32>
    %68 = tpu.matmul %67, %0, %cst_37 {dimension_numbers = #tpu.dot_dimension_numbers<[1], [0], [0], [1], [0, 0, 1, 1], [], []>} : vector<16x512xbf16>, vector<512x64xbf16>, vector<16x64xf32> -> vector<16x64xf32>
    %69 = vector.broadcast %1 : vector<1x64xf32> to vector<16x64xf32>
    %70 = arith.addf %68, %69 : vector<16x64xf32>
    %cst_38 = arith.constant 0.000000e+00 : f32
    %71 = vector.broadcast %cst_38 : f32 to vector<16x64xf32>
    %72 = arith.maximumf %70, %71 : vector<16x64xf32>
    %73 = arith.truncf %72 : vector<16x64xf32> to vector<16x64xbf16>
    %c0_39 = arith.constant 0 : index
    %c0_40 = arith.constant 0 : index
    %74 = vector.load %arg5[%c0_39, %c0_40] : memref<1x64xf32, #tpu.memory_space<vmem>>, vector<1x64xf32>
    %c0_41 = arith.constant 0 : index
    %c0_42 = arith.constant 0 : index
    %c0_43 = arith.constant 0 : index
    %75 = vector.load %arg4[%c0_41, %c0_42, %c0_43] : memref<9x64x64xbf16, #tpu.memory_space<vmem>>, vector<1x64x64xbf16>
    %76 = vector.shape_cast %75 : vector<1x64x64xbf16> to vector<64x64xbf16>
    %cst_44 = arith.constant dense<0.000000e+00> : vector<16x64xf32>
    %77 = tpu.matmul %9, %76, %cst_44 {dimension_numbers = #tpu.dot_dimension_numbers<[1], [0], [0], [1], [0, 0, 1, 1], [], []>} : vector<16x64xbf16>, vector<64x64xbf16>, vector<16x64xf32> -> vector<16x64xf32>
    %c1_45 = arith.constant 1 : index
    %c0_46 = arith.constant 0 : index
    %c0_47 = arith.constant 0 : index
    %78 = vector.load %arg4[%c1_45, %c0_46, %c0_47] : memref<9x64x64xbf16, #tpu.memory_space<vmem>>, vector<1x64x64xbf16>
    %79 = vector.shape_cast %78 : vector<1x64x64xbf16> to vector<64x64xbf16>
    %cst_48 = arith.constant dense<0.000000e+00> : vector<16x64xf32>
    %80 = tpu.matmul %17, %79, %cst_48 {dimension_numbers = #tpu.dot_dimension_numbers<[1], [0], [0], [1], [0, 0, 1, 1], [], []>} : vector<16x64xbf16>, vector<64x64xbf16>, vector<16x64xf32> -> vector<16x64xf32>
    %81 = arith.addf %77, %80 : vector<16x64xf32>
    %c2_49 = arith.constant 2 : index
    %c0_50 = arith.constant 0 : index
    %c0_51 = arith.constant 0 : index
    %82 = vector.load %arg4[%c2_49, %c0_50, %c0_51] : memref<9x64x64xbf16, #tpu.memory_space<vmem>>, vector<1x64x64xbf16>
    %83 = vector.shape_cast %82 : vector<1x64x64xbf16> to vector<64x64xbf16>
    %cst_52 = arith.constant dense<0.000000e+00> : vector<16x64xf32>
    %84 = tpu.matmul %25, %83, %cst_52 {dimension_numbers = #tpu.dot_dimension_numbers<[1], [0], [0], [1], [0, 0, 1, 1], [], []>} : vector<16x64xbf16>, vector<64x64xbf16>, vector<16x64xf32> -> vector<16x64xf32>
    %85 = arith.addf %81, %84 : vector<16x64xf32>
    %c3_53 = arith.constant 3 : index
    %c0_54 = arith.constant 0 : index
    %c0_55 = arith.constant 0 : index
    %86 = vector.load %arg4[%c3_53, %c0_54, %c0_55] : memref<9x64x64xbf16, #tpu.memory_space<vmem>>, vector<1x64x64xbf16>
    %87 = vector.shape_cast %86 : vector<1x64x64xbf16> to vector<64x64xbf16>
    %cst_56 = arith.constant dense<0.000000e+00> : vector<16x64xf32>
    %88 = tpu.matmul %33, %87, %cst_56 {dimension_numbers = #tpu.dot_dimension_numbers<[1], [0], [0], [1], [0, 0, 1, 1], [], []>} : vector<16x64xbf16>, vector<64x64xbf16>, vector<16x64xf32> -> vector<16x64xf32>
    %89 = arith.addf %85, %88 : vector<16x64xf32>
    %c4_57 = arith.constant 4 : index
    %c0_58 = arith.constant 0 : index
    %c0_59 = arith.constant 0 : index
    %90 = vector.load %arg4[%c4_57, %c0_58, %c0_59] : memref<9x64x64xbf16, #tpu.memory_space<vmem>>, vector<1x64x64xbf16>
    %91 = vector.shape_cast %90 : vector<1x64x64xbf16> to vector<64x64xbf16>
    %cst_60 = arith.constant dense<0.000000e+00> : vector<16x64xf32>
    %92 = tpu.matmul %41, %91, %cst_60 {dimension_numbers = #tpu.dot_dimension_numbers<[1], [0], [0], [1], [0, 0, 1, 1], [], []>} : vector<16x64xbf16>, vector<64x64xbf16>, vector<16x64xf32> -> vector<16x64xf32>
    %93 = arith.addf %89, %92 : vector<16x64xf32>
    %c5_61 = arith.constant 5 : index
    %c0_62 = arith.constant 0 : index
    %c0_63 = arith.constant 0 : index
    %94 = vector.load %arg4[%c5_61, %c0_62, %c0_63] : memref<9x64x64xbf16, #tpu.memory_space<vmem>>, vector<1x64x64xbf16>
    %95 = vector.shape_cast %94 : vector<1x64x64xbf16> to vector<64x64xbf16>
    %cst_64 = arith.constant dense<0.000000e+00> : vector<16x64xf32>
    %96 = tpu.matmul %49, %95, %cst_64 {dimension_numbers = #tpu.dot_dimension_numbers<[1], [0], [0], [1], [0, 0, 1, 1], [], []>} : vector<16x64xbf16>, vector<64x64xbf16>, vector<16x64xf32> -> vector<16x64xf32>
    %97 = arith.addf %93, %96 : vector<16x64xf32>
    %c6_65 = arith.constant 6 : index
    %c0_66 = arith.constant 0 : index
    %c0_67 = arith.constant 0 : index
    %98 = vector.load %arg4[%c6_65, %c0_66, %c0_67] : memref<9x64x64xbf16, #tpu.memory_space<vmem>>, vector<1x64x64xbf16>
    %99 = vector.shape_cast %98 : vector<1x64x64xbf16> to vector<64x64xbf16>
    %cst_68 = arith.constant dense<0.000000e+00> : vector<16x64xf32>
    %100 = tpu.matmul %57, %99, %cst_68 {dimension_numbers = #tpu.dot_dimension_numbers<[1], [0], [0], [1], [0, 0, 1, 1], [], []>} : vector<16x64xbf16>, vector<64x64xbf16>, vector<16x64xf32> -> vector<16x64xf32>
    %101 = arith.addf %97, %100 : vector<16x64xf32>
    %c7_69 = arith.constant 7 : index
    %c0_70 = arith.constant 0 : index
    %c0_71 = arith.constant 0 : index
    %102 = vector.load %arg4[%c7_69, %c0_70, %c0_71] : memref<9x64x64xbf16, #tpu.memory_space<vmem>>, vector<1x64x64xbf16>
    %103 = vector.shape_cast %102 : vector<1x64x64xbf16> to vector<64x64xbf16>
    %cst_72 = arith.constant dense<0.000000e+00> : vector<16x64xf32>
    %104 = tpu.matmul %65, %103, %cst_72 {dimension_numbers = #tpu.dot_dimension_numbers<[1], [0], [0], [1], [0, 0, 1, 1], [], []>} : vector<16x64xbf16>, vector<64x64xbf16>, vector<16x64xf32> -> vector<16x64xf32>
    %105 = arith.addf %101, %104 : vector<16x64xf32>
    %c8_73 = arith.constant 8 : index
    %c0_74 = arith.constant 0 : index
    %c0_75 = arith.constant 0 : index
    %106 = vector.load %arg4[%c8_73, %c0_74, %c0_75] : memref<9x64x64xbf16, #tpu.memory_space<vmem>>, vector<1x64x64xbf16>
    %107 = vector.shape_cast %106 : vector<1x64x64xbf16> to vector<64x64xbf16>
    %cst_76 = arith.constant dense<0.000000e+00> : vector<16x64xf32>
    %108 = tpu.matmul %73, %107, %cst_76 {dimension_numbers = #tpu.dot_dimension_numbers<[1], [0], [0], [1], [0, 0, 1, 1], [], []>} : vector<16x64xbf16>, vector<64x64xbf16>, vector<16x64xf32> -> vector<16x64xf32>
    %109 = arith.addf %105, %108 : vector<16x64xf32>
    %110 = vector.broadcast %74 : vector<1x64xf32> to vector<16x64xf32>
    %111 = arith.addf %109, %110 : vector<16x64xf32>
    %cst_77 = arith.constant 0.000000e+00 : f32
    %112 = vector.broadcast %cst_77 : f32 to vector<16x64xf32>
    %113 = arith.maximumf %111, %112 : vector<16x64xf32>
    %114 = arith.truncf %113 : vector<16x64xf32> to vector<16x64xbf16>
    %c0_78 = arith.constant 0 : index
    %c0_79 = arith.constant 0 : index
    %c0_80 = arith.constant 0 : index
    %115 = vector.load %arg6[%c0_78, %c0_79, %c0_80] : memref<1x64x512xbf16, #tpu.memory_space<vmem>>, vector<1x64x512xbf16>
    %116 = vector.shape_cast %115 : vector<1x64x512xbf16> to vector<64x512xbf16>
    %cst_81 = arith.constant dense<0.000000e+00> : vector<16x512xf32>
    %117 = tpu.matmul %114, %116, %cst_81 {dimension_numbers = #tpu.dot_dimension_numbers<[1], [0], [0], [1], [0, 0, 1, 1], [], []>} : vector<16x64xbf16>, vector<64x512xbf16>, vector<16x512xf32> -> vector<16x512xf32>
    %c0_82 = arith.constant 0 : index
    %c0_83 = arith.constant 0 : index
    %118 = vector.load %arg7[%c0_82, %c0_83] : memref<1x512xf32, #tpu.memory_space<vmem>>, vector<1x512xf32>
    %119 = vector.broadcast %118 : vector<1x512xf32> to vector<16x512xf32>
    %120 = arith.addf %117, %119 : vector<16x512xf32>
    %cst_84 = arith.constant 0.000000e+00 : f32
    %121 = vector.broadcast %cst_84 : f32 to vector<16x512xf32>
    %122 = arith.maximumf %120, %121 : vector<16x512xf32>
    %123 = arith.truncf %122 : vector<16x512xf32> to vector<16x512xbf16>
    %c0_85 = arith.constant 0 : index
    %c0_86 = arith.constant 0 : index
    %124 = vector.load %arg8[%c0_85, %c0_86] : memref<512x128xbf16, #tpu.memory_space<vmem>>, vector<512x128xbf16>
    %cst_87 = arith.constant dense<0.000000e+00> : vector<16x128xf32>
    %125 = tpu.matmul %123, %124, %cst_87 {dimension_numbers = #tpu.dot_dimension_numbers<[1], [0], [0], [1], [0, 0, 1, 1], [], []>} : vector<16x512xbf16>, vector<512x128xbf16>, vector<16x128xf32> -> vector<16x128xf32>
    %c0_88 = arith.constant 0 : index
    %c0_89 = arith.constant 0 : index
    %126 = vector.load %arg9[%c0_88, %c0_89] : memref<1x128xf32, #tpu.memory_space<vmem>>, vector<1x128xf32>
    %127 = vector.broadcast %126 : vector<1x128xf32> to vector<16x128xf32>
    %128 = arith.addf %125, %127 : vector<16x128xf32>
    %c0_90 = arith.constant 0 : index
    %c0_91 = arith.constant 0 : index
    %129 = vector.load %arg10[%c0_90, %c0_91] : memref<16x128xf32, #tpu.memory_space<vmem>>, vector<16x128xf32>
    tpu.vector_store %arg10[%c0_90, %c0_91], %128 {strides = array<i32>} : memref<16x128xf32, #tpu.memory_space<vmem>>, vector<16x128xf32>,
    return
  }
  func.func @transform_0(%arg0: i32) -> (i32, i32, i32) {
    %c0_i32 = arith.constant 0 : i32
    %c0_i32_0 = arith.constant 0 : i32
    %c0_i32_1 = arith.constant 0 : i32
    return %c0_i32, %arg0, %c0_i32_0 : i32, i32, i32
  }
  func.func @transform_1(%arg0: i32) -> (i32, i32) {
    %c0_i32 = arith.constant 0 : i32
    %c0_i32_0 = arith.constant 0 : i32
    %c0_i32_1 = arith.constant 0 : i32
    return %c0_i32, %c0_i32_0 : i32, i32
  }
  func.func @transform_2(%arg0: i32) -> (i32, i32) {
    %c0_i32 = arith.constant 0 : i32
    %c0_i32_0 = arith.constant 0 : i32
    %c0_i32_1 = arith.constant 0 : i32
    return %c0_i32, %c0_i32_0 : i32, i32
  }
  func.func @transform_3(%arg0: i32) -> (i32, i32, i32) {
    %c0_i32 = arith.constant 0 : i32
    %c0_i32_0 = arith.constant 0 : i32
    %c0_i32_1 = arith.constant 0 : i32
    %c0_i32_2 = arith.constant 0 : i32
    return %c0_i32, %c0_i32_0, %c0_i32_1 : i32, i32, i32
  }
  func.func @transform_4(%arg0: i32) -> (i32, i32) {
    %c0_i32 = arith.constant 0 : i32
    %c0_i32_0 = arith.constant 0 : i32
    %c0_i32_1 = arith.constant 0 : i32
    return %c0_i32, %c0_i32_0 : i32, i32
  }
  func.func @transform_5(%arg0: i32) -> (i32, i32, i32) {
    %c0_i32 = arith.constant 0 : i32
    %c0_i32_0 = arith.constant 0 : i32
    %c0_i32_1 = arith.constant 0 : i32
    %c0_i32_2 = arith.constant 0 : i32
    return %c0_i32, %c0_i32_0, %c0_i32_1 : i32, i32, i32
  }
  func.func @transform_6(%arg0: i32) -> (i32, i32) {
    %c0_i32 = arith.constant 0 : i32
    %c0_i32_0 = arith.constant 0 : i32
    %c0_i32_1 = arith.constant 0 : i32
    return %c0_i32, %c0_i32_0 : i32, i32
  }
  func.func @transform_7(%arg0: i32) -> (i32, i32) {
    %c0_i32 = arith.constant 0 : i32
    %c0_i32_0 = arith.constant 0 : i32
    %c0_i32_1 = arith.constant 0 : i32
    return %c0_i32, %c0_i32_0 : i32, i32
  }
  func.func @transform_8(%arg0: i32) -> (i32, i32) {
    %c0_i32 = arith.constant 0 : i32
    %c0_i32_0 = arith.constant 0 : i32
    %c0_i32_1 = arith.constant 0 : i32
    return %c0_i32, %c0_i32_0 : i32, i32
  }
  func.func @transform_9(%arg0: i32) -> (i32, i32) {
    %c0_i32 = arith.constant 0 : i32
    %c0_i32_0 = arith.constant 0 : i32
    return %arg0, %c0_i32 : i32, i32
  }
}

</mosaic_0001>

<bundles_post_ra>
// kernel: critic_forward.2
= control target key start
LH: loop header
LB: loop body
LE: loop exit
PB: predicated region body
PF: predicated region fallthrough
CT: control target
= control target key end

     0   :  { %s895_s12 = smov 0   ;;  %s897_s13 = smov 0   ;;  %s993_s0 = inlined_call_operand.vmem [shape: bf16[128,256], index: 0, kind: input, shape index: {}]   ;;  %s994_s1 = inlined_call_operand.vmem [shape: bf16[256,128], index: 1, kind: input, shape index: {}]   ;;  %s995_s2 = inlined_call_operand.vmem [shape: f32[1,128], index: 2, kind: input, shape index: {}]   ;;  %s996_s3 = inlined_call_operand.vmem [shape: bf16[128,128], index: 3, kind: output, shape index: {}]  }
   0x1   :  { %s899_s14 = smov 0  }
   0x2 LB: > { %s25_s15 = sadd.s32 1, %s869_s13  ;;  %p670_p0 = scmp.ge.s32.totalorder %s873_s14, 1  ;;  %s873_s14 = sphi %s899_s14, %s13_s14   ;;  %s869_s13 = sphi %s897_s13, %s998_s13   ;;  %s865_s12 = sphi %s895_s12, %s997_s12  }
   0x3   : > { %p27_p1 = scmp.ge.s32.totalorder %s25_s15, 2  ;;  %p169_p2 = scmp.lt.s32.totalorder %s873_s14, 3 }
   0x5   : > { %s1000_s15 = smov (%p27_p1, %s25_s15), 0  ;;  %p170_p3 = pnand %p670_p0, %p169_p2 }
   0x6   : > { %v823_v0 = vld [vmem:[%s994_s1 + $0x40] sm:$0xff] (!%p170_p3)   ;;  %s671_s18 = sshll.u32 (!%p170_p3), %s865_s12, 3  ;;  %v825_v2 = vld [vmem:[%s994_s1 + $0x48] sm:$0xff] (!%p170_p3)   ;;  %v827_v4 = vld [vmem:[%s994_s1 + $0x50] sm:$0xff] (!%p170_p3)  }
   0x7   : > { %173 = sbr.rel (%p170_p3) target bundleno = 272 (0x110), region = 32  ;;  %v824_v1 = vld [vmem:[%s994_s1] sm:$0xff] (!%p170_p3)   ;;  %743 = vmatprep.subr.bf16.mxu0 (!%p170_p3), %v823_v0  ;;  %783 = vmatprep.subr.bf16.mxu1 (!%p170_p3), %v823_v0  ;;  %v826_v3 = vld [vmem:[%s994_s1 + $0x8] sm:$0xff] (!%p170_p3)   ;;  %p205_p4 = scmp.lt.s32.totalorder (!%p170_p3), %s671_s18, 15  ;;  %v828_v5 = vld [vmem:[%s994_s1 + $0x10] sm:$0xff] (!%p170_p3)  }
   0x8   : > { %744 = vmatpush3.bf16.msra.mxu0 (!%p170_p3), %v824_v1  ;;  %791 = vmatpush3.bf16.msra.mxu1 (!%p170_p3), %v824_v1  ;;  %v829_v6 = vld [vmem:[%s994_s1 + $0x58] sm:$0xff] (!%p170_p3)   ;;  %v831_v8 = vld [vmem:[%s994_s1 + $0x60] sm:$0xff] (!%p170_p3)   ;;  %v833_v10 = vld [vmem:[%s994_s1 + $0x68] sm:$0xff] (!%p170_p3)  }
   0x9   : > { %745 = vmatprep.subr.bf16.mxu0 (!%p170_p3), %v825_v2  ;;  %784 = vmatprep.subr.bf16.mxu1 (!%p170_p3), %v825_v2  ;;  %v830_v7 = vld [vmem:[%s994_s1 + $0x18] sm:$0xff] (!%p170_p3)   ;;  %v832_v9 = vld [vmem:[%s994_s1 + $0x20] sm:$0xff] (!%p170_p3)   ;;  %v834_v13 = vld [vmem:[%s994_s1 + $0x28] sm:$0xff] (!%p170_p3)  }
   0xa   : > { %v835_v14 = vld [vmem:[%s994_s1 + $0x70] sm:$0xff] (!%p170_p3)   ;;  %v837_v16 = vld [vmem:[%s994_s1 + $0x78] sm:$0xff] (!%p170_p3)   ;;  %v700_v27 = vld [vmem:[%s995_s2] ss:$0 sm:$0xff] (!%p170_p3) }
   0xb   : > { %v836_v15 = vld [vmem:[%s994_s1 + $0x30] sm:$0xff] (!%p170_p3)   ;;  %v838_v17 = vld [vmem:[%s994_s1 + $0x38] sm:$0xff] (!%p170_p3)  }
   0xc   : > { %746 = vmatpush3.bf16.msra.mxu0 (!%p170_p3), %v826_v3  ;;  %792 = vmatpush3.bf16.msra.mxu1 (!%p170_p3), %v826_v3 }
   0xd   : > { %747 = vmatprep.subr.bf16.mxu0 (!%p170_p3), %v827_v4  ;;  %785 = vmatprep.subr.bf16.mxu1 (!%p170_p3), %v827_v4 }
   0xe   : > { %s1002_s18 = smov (!%p205_p4, %s671_s18), 15 }
   0xf   : > { %s711_s6 = sshll.u32 %s1002_s18, 3  ;;  %s675_s5 = sshll.u32 %s1002_s18, 2 }
  0x10   : > { %748 = vmatpush3.bf16.msra.mxu0 %v828_v5  ;;  %793 = vmatpush3.bf16.msra.mxu1 %v828_v5  ;;  %s946_s11 = scalar_lea.vmem %s993_s0, %s711_s6  ;;  %s225_s8 = scalar_lea.vmem %s996_s3, %s675_s5 }
  0x11   : > { %749 = vmatprep.subr.bf16.mxu0 %v829_v6  ;;  %786 = vmatprep.subr.bf16.mxu1 %v829_v6  ;;  %v841_v11 = vld [vmem:[%s946_s11 + $0x4] ss:$8 sps:$4 sm:$0xff]   ;;  %v839_v18 = vld [vmem:[%s946_s11] ss:$8 sps:$4 sm:$0xff]   ;;  %v845_v20 = vld [vmem:[%s946_s11 + $0x14] ss:$8 sps:$4 sm:$0xff]  }
  0x12   : > { %v844_v12 = vld [vmem:[%s946_s11 + $0x24] ss:$8 sps:$4 sm:$0xff]   ;;  %456 = vmatprep.mubr.bf16.mxu0 %v841_v11  ;;  %v842_v19 = vld [vmem:[%s946_s11 + $0x20] ss:$8 sps:$4 sm:$0xff]   ;;  %v847_v21 = vld [vmem:[%s946_s11 + $0x34] ss:$8 sps:$4 sm:$0xff]  }
  0x13   : > { %472 = vmatprep.mubr.bf16.mxu1 %v844_v12  ;;  %v849_v22 = vld [vmem:[%s946_s11 + $0x10] ss:$8 sps:$4 sm:$0xff]  }
  0x14   : > { %750 = vmatpush3.bf16.msra.mxu0 %v830_v7  ;;  %794 = vmatpush3.bf16.msra.mxu1 %v830_v7  ;;  %v850_v23 = vld [vmem:[%s946_s11 + $0x30] ss:$8 sps:$4 sm:$0xff]  }
  0x15   : > { %751 = vmatprep.subr.bf16.mxu0 %v831_v8  ;;  %787 = vmatprep.subr.bf16.mxu1 %v831_v8 }
  0x18   : > { %752 = vmatpush3.bf16.msra.mxu0 %v832_v9  ;;  %795 = vmatpush3.bf16.msra.mxu1 %v832_v9 }
  0x19   : > { %753 = vmatprep.subr.bf16.mxu0 %v833_v10  ;;  %788 = vmatprep.subr.bf16.mxu1 %v833_v10 }
  0x1c   : > { %754 = vmatpush3.bf16.msra.mxu0 %v834_v13  ;;  %796 = vmatpush3.bf16.msra.mxu1 %v834_v13 }
  0x1d   : > { %755 = vmatprep.subr.bf16.mxu0 %v835_v14  ;;  %789 = vmatprep.subr.bf16.mxu1 %v835_v14 }
  0x20   : > { %756 = vmatpush3.bf16.msra.mxu0 %v836_v15  ;;  %797 = vmatpush3.bf16.msra.mxu1 %v836_v15 }
  0x21   : > { %757 = vmatprep.subr.bf16.mxu0 %v837_v16  ;;  %790 = vmatprep.subr.bf16.mxu1 %v837_v16 }
  0x24   : > { %758 = vmatpush3.bf16.msra.mxu0 %v838_v17  ;;  %798 = vmatpush3.bf16.msra.mxu1 %v838_v17 }
  0x27   : > { %457 = vmatmul.mubr.bf16.vlgmr.msra.gmra.mrb[0].mxu0 %v839_v18  ;;  %473 = vmatmul.mubr.bf16.vlgmr.msra.gmra.mrb[0].mxu1 %v842_v19 }
  0x28   : > { %464 = vmatprep.mubr.bf16.mxu0 %v845_v20  ;;  %480 = vmatprep.mubr.bf16.mxu1 %v847_v21 }
  0x2f   : > { %465 = vmatmul.mubr.bf16.gmra.mrb[4].mxu0 %v849_v22  ;;  %481 = vmatmul.mubr.bf16.gmra.mrb[4].mxu1 %v850_v23 }
  0xfa   : > { %v759_v24 = vpop.f32.mrb[0].mxu0  ;;  %v771_v25 = vpop.f32.mrb[0].mxu1 }
  0xfb   : > { %v760_v26 = vpop.f32.mrb[1].mxu0  ;;  %v772_v28 = vpop.f32.mrb[1].mxu1 }
  0xfc   : > { %v761_v29 = vadd.f32 %v760_v26, %v759_v24  ;;  %v773_v30 = vadd.f32 %v772_v28, %v771_v25  ;;  %v762_v31 = vpop.f32.mrb[2].mxu0  ;;  %v774_v32 = vpop.f32.mrb[2].mxu1 }
  0xfd   : > { %v763_v33 = vpop.f32.mrb[3].mxu0  ;;  %v775_v34 = vpop.f32.mrb[3].mxu1 }
  0xfe   : > { %v523_v35 = vadd.f32 %v761_v29, %v700_v27  ;;  %v527_v36 = vadd.f32 %v773_v30, %v700_v27  ;;  %v764_v37 = vadd.f32 %v763_v33, %v762_v31  ;;  %v776_v38 = vadd.f32 %v775_v34, %v774_v32 }
 0x100   : > { %v524_v39 = vadd.f32 %v764_v37, %v700_v27  ;;  %v528_v40 = vadd.f32 %v776_v38, %v700_v27  ;;  %v531_v41 = vmax.f32 %v523_v35, 0.0  ;;  %v535_v42 = vmax.f32 %v527_v36, 0.0 }
 0x102   : > { %v532_v43 = vmax.f32 %v524_v39, 0.0  ;;  %v536_v44 = vmax.f32 %v528_v40, 0.0  ;;  %v765_v45 = vpop.f32.mrb[4].mxu0  ;;  %v777_v46 = vpop.f32.mrb[4].mxu1 }
 0x103   : > { %v766_v47 = vpop.f32.mrb[5].mxu0  ;;  %v778_v48 = vpop.f32.mrb[5].mxu1 }
 0x104   : > { %v723_v49 = vpack.c.bf16 %v532_v43, %v531_v41  ;;  %v733_v50 = vpack.c.bf16 %v536_v44, %v535_v42  ;;  %v767_v51 = vadd.f32 %v766_v47, %v765_v45  ;;  %v779_v52 = vadd.f32 %v778_v48, %v777_v46  ;;  %v768_v53 = vpop.f32.mrb[6].mxu0  ;;  %v780_v54 = vpop.f32.mrb[6].mxu1 }
 0x105   : > { %v769_v55 = vpop.f32.mrb[7].mxu0  ;;  %v781_v56 = vpop.f32.mrb[7].mxu1 }
 0x106   : > { %724 = vst [vmem:[%s225_s8] sm:$0xff] %v723_v49   ;;  %741 = vst [vmem:[%s225_s8 + $0x10] sm:$0xff] %v733_v50   ;;  %v525_v57 = vadd.f32 %v767_v51, %v700_v27  ;;  %v529_v58 = vadd.f32 %v779_v52, %v700_v27  ;;  %v770_v59 = vadd.f32 %v769_v55, %v768_v53 }
 0x107   : > { %v782_v60 = vadd.f32 %v781_v56, %v780_v54 }
 0x108   : > { %v526_v61 = vadd.f32 %v770_v59, %v700_v27  ;;  %v533_v63 = vmax.f32 %v525_v57, 0.0  ;;  %v537_v0 = vmax.f32 %v529_v58, 0.0 }
 0x109   : > { %v530_v62 = vadd.f32 %v782_v60, %v700_v27 }
 0x10a   : > { %v534_v1 = vmax.f32 %v526_v61, 0.0 }
 0x10b   : > { %v538_v2 = vmax.f32 %v530_v62, 0.0 }
 0x10c   : > { %v728_v3 = vpack.c.bf16 %v534_v1, %v533_v63 }
 0x10d   : > { %v738_v4 = vpack.c.bf16 %v538_v2, %v537_v0 }
 0x10e   : > { %740 = vst [vmem:[%s225_s8 + $0x8] sm:$0xff] %v728_v3  }
 0x10f   : > { %742 = vst [vmem:[%s225_s8 + $0x18] sm:$0xff] %v738_v4  }
 0x110 PF: > { %s13_s14 = sadd.s32 1, %s873_s14   ;;  %s997_s12 = smov %s869_s13 }
 0x111   : > { %p10_p5 = scmp.ge.s32.totalorder %s13_s14, 4   ;;  %s998_s13 = smov %s1000_s15 }
 0x113   :  { %12 = sbr.rel (!%p10_p5) target bundleno = 2 (0x2), region = 73 }

// kernel: critic_forward.3
= control target key start
LH: loop header
LB: loop body
LE: loop exit
PB: predicated region body
PF: predicated region fallthrough
CT: control target
= control target key end

     0   :  { %vm3624_vm0 = vmmov 0   ;;  %vm1327_vm1 = vcmask 523264   ;;  %s4616_s1 = inlined_call_operand.vmem [shape: bf16[512,64], index: 1, kind: input, shape index: {}]   ;;  %s4617_s0 = inlined_call_operand.vmem [shape: bf16[9,16,512], index: 0, kind: input, shape index: {}]   ;;  %s4618_s3 = inlined_call_operand.vmem [shape: bf16[9,64,64], index: 3, kind: input, shape index: {}]   ;;  %s4619_s2 = inlined_call_operand.vmem [shape: f32[1,64], index: 2, kind: input, shape index: {}]   ;;  %s4620_s5 = inlined_call_operand.vmem [shape: bf16[1,64,512], index: 5, kind: input, shape index: {}]   ;;  %s4621_s7 = inlined_call_operand.vmem [shape: bf16[512,128], index: 7, kind: input, shape index: {}]   ;;  %s4622_s4 = inlined_call_operand.vmem [shape: f32[1,64], index: 4, kind: input, shape index: {}]   ;;  %s4623_s6 = inlined_call_operand.vmem [shape: f32[1,512], index: 6, kind: input, shape index: {}]   ;;  %s4624_s8 = inlined_call_operand.vmem [shape: f32[1,128], index: 8, kind: input, shape index: {}]   ;;  %s4625_s9 = inlined_call_operand.vmem [shape: f32[16,128], index: 9, kind: output, shape index: {}]  }
   0x1   :  { %v3679_v0 = vld [vmem:[%s4616_s1 + $0x40] sm:$0xff]   ;;  %v3702_v4 = vld [vmem:[%s4616_s1 + $0x48] sm:$0xff]   ;;  %v3726_v8 = vld [vmem:[%s4616_s1 + $0x50] sm:$0xff]  }
   0x2   :  { %v3684_v1 = vld [vmem:[%s4616_s1 + $0xc0] sm:$0xff]   ;;  %2836 = vmatprep.subr.bf16.mxu0 %v3679_v0  ;;  %v3708_v5 = vld [vmem:[%s4616_s1 + $0xc8] sm:$0xff]   ;;  %v3732_v9 = vld [vmem:[%s4616_s1 + $0xd0] sm:$0xff]  }
   0x3   :  { %v3690_v2 = vld [vmem:[%s4616_s1] sm:$0xff]   ;;  %2858 = vmatprep.subr.bf16.mxu1 %v3684_v1  ;;  %v3714_v6 = vld [vmem:[%s4616_s1 + $0x8] sm:$0xff]   ;;  %v3738_v10 = vld [vmem:[%s4616_s1 + $0x10] sm:$0xff]  }
   0x4   :  { %v3696_v3 = vld [vmem:[%s4616_s1 + $0x80] sm:$0xff]   ;;  %2837 = vmatpush3.bf16.msra.mxu0 %v3690_v2  ;;  %v3720_v7 = vld [vmem:[%s4616_s1 + $0x88] sm:$0xff]   ;;  %v3744_v11 = vld [vmem:[%s4616_s1 + $0x90] sm:$0xff]  }
   0x5   :  { %2859 = vmatpush3.bf16.msra.mxu1 %v3696_v3  ;;  %2838 = vmatprep.subr.bf16.mxu0 %v3702_v4  ;;  %v3750_v12 = vld [vmem:[%s4616_s1 + $0x58] sm:$0xff]   ;;  %v3774_v16 = vld [vmem:[%s4616_s1 + $0x60] sm:$0xff]   ;;  %v3798_v20 = vld [vmem:[%s4616_s1 + $0x68] sm:$0xff]  }
   0x6   :  { %2860 = vmatprep.subr.bf16.mxu1 %v3708_v5  ;;  %v3756_v13 = vld [vmem:[%s4616_s1 + $0xd8] sm:$0xff]   ;;  %v3780_v17 = vld [vmem:[%s4616_s1 + $0xe0] sm:$0xff]   ;;  %v3804_v21 = vld [vmem:[%s4616_s1 + $0xe8] sm:$0xff]  }
   0x7   :  { %v3762_v14 = vld [vmem:[%s4616_s1 + $0x18] sm:$0xff]   ;;  %v3786_v18 = vld [vmem:[%s4616_s1 + $0x20] sm:$0xff]   ;;  %v3810_v22 = vld [vmem:[%s4616_s1 + $0x28] sm:$0xff]  }
   0x8   :  { %2839 = vmatpush3.bf16.msra.mxu0 %v3714_v6  ;;  %v3768_v15 = vld [vmem:[%s4616_s1 + $0x98] sm:$0xff]   ;;  %v3792_v19 = vld [vmem:[%s4616_s1 + $0xa0] sm:$0xff]   ;;  %v3816_v23 = vld [vmem:[%s4616_s1 + $0xa8] sm:$0xff]  }
   0x9   :  { %2861 = vmatpush3.bf16.msra.mxu1 %v3720_v7  ;;  %2840 = vmatprep.subr.bf16.mxu0 %v3726_v8  ;;  %v3822_v24 = vld [vmem:[%s4616_s1 + $0x70] sm:$0xff]   ;;  %v3846_v28 = vld [vmem:[%s4616_s1 + $0x78] sm:$0xff]  }
   0xa   :  { %2862 = vmatprep.subr.bf16.mxu1 %v3732_v9  ;;  %v3828_v25 = vld [vmem:[%s4616_s1 + $0xf0] sm:$0xff]   ;;  %v3852_v29 = vld [vmem:[%s4616_s1 + $0xf8] sm:$0xff]  }
   0xb   :  { %v3834_v26 = vld [vmem:[%s4616_s1 + $0x30] sm:$0xff]   ;;  %v3858_v30 = vld [vmem:[%s4616_s1 + $0x38] sm:$0xff]  }
   0xc   :  { %2841 = vmatpush3.bf16.msra.mxu0 %v3738_v10  ;;  %v3840_v27 = vld [vmem:[%s4616_s1 + $0xb0] sm:$0xff]   ;;  %v3864_v31 = vld [vmem:[%s4616_s1 + $0xb8] sm:$0xff]  }
   0xd   :  { %2863 = vmatpush3.bf16.msra.mxu1 %v3744_v11  ;;  %2842 = vmatprep.subr.bf16.mxu0 %v3750_v12  ;;  %v3464_v32 = vld [vmem:[%s4617_s0] ss:$16 sps:$4 sm:$0xff]   ;;  %v3466_v33 = vld [vmem:[%s4617_s0 + $0x4] ss:$16 sps:$4 sm:$0xff]   ;;  %v3467_v34 = vld [vmem:[%s4617_s0 + $0x8] ss:$16 sps:$4 sm:$0xff]  }
   0xe   :  { %2864 = vmatprep.subr.bf16.mxu1 %v3756_v13  ;;  %v3469_v35 = vld [vmem:[%s4617_s0 + $0xc] ss:$16 sps:$4 sm:$0xff]   ;;  %352 = vmatprep.mubr.bf16.mxu0 %v3466_v33  ;;  %v3472_v36 = vld [vmem:[%s4617_s0 + $0x24] ss:$16 sps:$4 sm:$0xff]   ;;  %v3470_v38 = vld [vmem:[%s4617_s0 + $0x20] ss:$16 sps:$4 sm:$0xff]  }
   0xf   :  { %393 = vmatprep.mubr.bf16.mxu1 %v3469_v35  ;;  %v3475_v37 = vld [vmem:[%s4617_s0 + $0x2c] ss:$16 sps:$4 sm:$0xff]   ;;  %v3473_v39 = vld [vmem:[%s4617_s0 + $0x28] ss:$16 sps:$4 sm:$0xff]   ;;  %v3478_v40 = vld [vmem:[%s4617_s0 + $0x44] ss:$16 sps:$4 sm:$0xff]  }
  0x10   :  { %2843 = vmatpush3.bf16.msra.mxu0 %v3762_v14  ;;  %v3481_v41 = vld [vmem:[%s4617_s0 + $0x4c] ss:$16 sps:$4 sm:$0xff]   ;;  %v3476_v42 = vld [vmem:[%s4617_s0 + $0x40] ss:$16 sps:$4 sm:$0xff]   ;;  %v3479_v43 = vld [vmem:[%s4617_s0 + $0x48] ss:$16 sps:$4 sm:$0xff]  }
  0x11   :  { %2865 = vmatpush3.bf16.msra.mxu1 %v3768_v15  ;;  %2844 = vmatprep.subr.bf16.mxu0 %v3774_v16  ;;  %v3484_v44 = vld [vmem:[%s4617_s0 + $0x64] ss:$16 sps:$4 sm:$0xff]   ;;  %v3487_v45 = vld [vmem:[%s4617_s0 + $0x6c] ss:$16 sps:$4 sm:$0xff]   ;;  %v3482_v46 = vld [vmem:[%s4617_s0 + $0x60] ss:$16 sps:$4 sm:$0xff]  }
  0x12   :  { %2866 = vmatprep.subr.bf16.mxu1 %v3780_v17  ;;  %v3485_v47 = vld [vmem:[%s4617_s0 + $0x68] ss:$16 sps:$4 sm:$0xff]   ;;  %v3490_v48 = vld [vmem:[%s4617_s0 + $0x84] ss:$16 sps:$4 sm:$0xff]   ;;  %v3493_v49 = vld [vmem:[%s4617_s0 + $0x8c] ss:$16 sps:$4 sm:$0xff]  }
  0x13   :  { %v3488_v50 = vld [vmem:[%s4617_s0 + $0x80] ss:$16 sps:$4 sm:$0xff]   ;;  %v3491_v51 = vld [vmem:[%s4617_s0 + $0x88] ss:$16 sps:$4 sm:$0xff]   ;;  %v3496_v52 = vld [vmem:[%s4617_s0 + $0xa4] ss:$16 sps:$4 sm:$0xff]  }
  0x14   :  { %2845 = vmatpush3.bf16.msra.mxu0 %v3786_v18  ;;  %v3499_v53 = vld [vmem:[%s4617_s0 + $0xac] ss:$16 sps:$4 sm:$0xff]   ;;  %v3494_v54 = vld [vmem:[%s4617_s0 + $0xa0] ss:$16 sps:$4 sm:$0xff]   ;;  %v3497_v55 = vld [vmem:[%s4617_s0 + $0xa8] ss:$16 sps:$4 sm:$0xff]  }
  0x15   :  { %2867 = vmatpush3.bf16.msra.mxu1 %v3792_v19  ;;  %2846 = vmatprep.subr.bf16.mxu0 %v3798_v20  ;;  %v3502_v56 = vld [vmem:[%s4617_s0 + $0xc4] ss:$16 sps:$4 sm:$0xff]   ;;  %v3505_v57 = vld [vmem:[%s4617_s0 + $0xcc] ss:$16 sps:$4 sm:$0xff]   ;;  %v3500_v58 = vld [vmem:[%s4617_s0 + $0xc0] ss:$16 sps:$4 sm:$0xff]  }
  0x16   :  { %2868 = vmatprep.subr.bf16.mxu1 %v3804_v21  ;;  %v3503_v59 = vld [vmem:[%s4617_s0 + $0xc8] ss:$16 sps:$4 sm:$0xff]   ;;  %v3508_v60 = vld [vmem:[%s4617_s0 + $0xe4] ss:$16 sps:$4 sm:$0xff]   ;;  %v3511_v61 = vld [vmem:[%s4617_s0 + $0xec] ss:$16 sps:$4 sm:$0xff]  }
  0x18   :  { %2847 = vmatpush3.bf16.msra.mxu0 %v3810_v22 }
  0x19   :  { %2869 = vmatpush3.bf16.msra.mxu1 %v3816_v23  ;;  %2848 = vmatprep.subr.bf16.mxu0 %v3822_v24 }
  0x1a   :  { %2870 = vmatprep.subr.bf16.mxu1 %v3828_v25 }
  0x1c   :  { %2849 = vmatpush3.bf16.msra.mxu0 %v3834_v26 }
  0x1d   :  { %2871 = vmatpush3.bf16.msra.mxu1 %v3840_v27  ;;  %2850 = vmatprep.subr.bf16.mxu0 %v3846_v28 }
  0x1e   :  { %2872 = vmatprep.subr.bf16.mxu1 %v3852_v29 }
  0x20   :  { %2851 = vmatpush3.bf16.msra.mxu0 %v3858_v30 }
  0x21   :  { %2873 = vmatpush3.bf16.msra.mxu1 %v3864_v31  ;;  %2880 = vmatprep.subr.bf16.mxu0 %v3679_v0 }
  0x22   :  { %2902 = vmatprep.subr.bf16.mxu1 %v3684_v1 }
  0x23   :  { %353 = vmatmul.mubr.bf16.vlgmr.msra.gmra.mrb[0].mxu0 %v3464_v32 }
  0x24   :  { %394 = vmatmul.mubr.bf16.vlgmr.msra.gmra.mrb[0].mxu1 %v3467_v34  ;;  %2881 = vmatpush3.bf16.msra.mxu0 %v3690_v2  ;;  %v3506_v34 = vld [vmem:[%s4617_s0 + $0xe0] ss:$16 sps:$4 sm:$0xff]  }
  0x25   :  { %2903 = vmatpush3.bf16.msra.mxu1 %v3696_v3  ;;  %2882 = vmatprep.subr.bf16.mxu0 %v3702_v4 }
  0x26   :  { %2904 = vmatprep.subr.bf16.mxu1 %v3708_v5  ;;  %462 = vmatprep.mubr.bf16.mxu0 %v3472_v36 }
  0x27   :  { %503 = vmatprep.mubr.bf16.mxu1 %v3475_v37  ;;  %v3509_v37 = vld [vmem:[%s4617_s0 + $0xe8] ss:$16 sps:$4 sm:$0xff]  }
  0x28   :  { %2883 = vmatpush3.bf16.msra.mxu0 %v3714_v6 }
  0x29   :  { %2905 = vmatpush3.bf16.msra.mxu1 %v3720_v7  ;;  %2884 = vmatprep.subr.bf16.mxu0 %v3726_v8 }
  0x2a   :  { %2906 = vmatprep.subr.bf16.mxu1 %v3732_v9 }
  0x2c   :  { %2885 = vmatpush3.bf16.msra.mxu0 %v3738_v10 }
  0x2d   :  { %2907 = vmatpush3.bf16.msra.mxu1 %v3744_v11  ;;  %2886 = vmatprep.subr.bf16.mxu0 %v3750_v12 }
  0x2e   :  { %2908 = vmatprep.subr.bf16.mxu1 %v3756_v13 }
  0x30   :  { %2887 = vmatpush3.bf16.msra.mxu0 %v3762_v14 }
  0x31   :  { %2909 = vmatpush3.bf16.msra.mxu1 %v3768_v15  ;;  %2888 = vmatprep.subr.bf16.mxu0 %v3774_v16 }
  0x32   :  { %2910 = vmatprep.subr.bf16.mxu1 %v3780_v17 }
  0x34   :  { %2889 = vmatpush3.bf16.msra.mxu0 %v3786_v18 }
  0x35   :  { %2911 = vmatpush3.bf16.msra.mxu1 %v3792_v19  ;;  %2890 = vmatprep.subr.bf16.mxu0 %v3798_v20 }
  0x36   :  { %2912 = vmatprep.subr.bf16.mxu1 %v3804_v21 }
  0x38   :  { %2891 = vmatpush3.bf16.msra.mxu0 %v3810_v22 }
  0x39   :  { %2913 = vmatpush3.bf16.msra.mxu1 %v3816_v23  ;;  %2892 = vmatprep.subr.bf16.mxu0 %v3822_v24 }
  0x3a   :  { %2914 = vmatprep.subr.bf16.mxu1 %v3828_v25 }
  0x3c   :  { %2893 = vmatpush3.bf16.msra.mxu0 %v3834_v26 }
  0x3d   :  { %2915 = vmatpush3.bf16.msra.mxu1 %v3840_v27  ;;  %2894 = vmatprep.subr.bf16.mxu0 %v3846_v28 }
  0x3e   :  { %2916 = vmatprep.subr.bf16.mxu1 %v3852_v29 }
  0x40   :  { %2895 = vmatpush3.bf16.msra.mxu0 %v3858_v30 }
  0x41   :  { %2917 = vmatpush3.bf16.msra.mxu1 %v3864_v31  ;;  %2924 = vmatprep.subr.bf16.mxu0 %v3679_v0 }
  0x42   :  { %2946 = vmatprep.subr.bf16.mxu1 %v3684_v1 }
  0x43   :  { %463 = vmatmul.mubr.bf16.vlgmr.msra.gmra.mrb[4].mxu0 %v3470_v38  ;;  %v3610_v38 = vld [vmem:[%s4616_s1 + $0x40] sm:$0xff]  }
  0x44   :  { %504 = vmatmul.mubr.bf16.vlgmr.msra.gmra.mrb[4].mxu1 %v3473_v39  ;;  %2925 = vmatpush3.bf16.msra.mxu0 %v3690_v2 }
  0x45   :  { %2947 = vmatpush3.bf16.msra.mxu1 %v3696_v3  ;;  %2926 = vmatprep.subr.bf16.mxu0 %v3702_v4 }
  0x46   :  { %2948 = vmatprep.subr.bf16.mxu1 %v3708_v5  ;;  %572 = vmatprep.mubr.bf16.mxu0 %v3478_v40  ;;  %v3611_v40 = vld [vmem:[%s4616_s1 + $0xc0] sm:$0xff]  }
  0x47   :  { %613 = vmatprep.mubr.bf16.mxu1 %v3481_v41  ;;  %v3514_v41 = vld [vmem:[%s4617_s0 + $0x104] ss:$16 sps:$4 sm:$0xff]  }
  0x48   :  { %2927 = vmatpush3.bf16.msra.mxu0 %v3714_v6 }
  0x49   :  { %2949 = vmatpush3.bf16.msra.mxu1 %v3720_v7  ;;  %2928 = vmatprep.subr.bf16.mxu0 %v3726_v8 }
  0x4a   :  { %2950 = vmatprep.subr.bf16.mxu1 %v3732_v9 }
  0x4c   :  { %2929 = vmatpush3.bf16.msra.mxu0 %v3738_v10 }
  0x4d   :  { %2951 = vmatpush3.bf16.msra.mxu1 %v3744_v11  ;;  %2930 = vmatprep.subr.bf16.mxu0 %v3750_v12 }
  0x4e   :  { %2952 = vmatprep.subr.bf16.mxu1 %v3756_v13 }
  0x50   :  { %2931 = vmatpush3.bf16.msra.mxu0 %v3762_v14 }
  0x51   :  { %2953 = vmatpush3.bf16.msra.mxu1 %v3768_v15  ;;  %2932 = vmatprep.subr.bf16.mxu0 %v3774_v16 }
  0x52   :  { %2954 = vmatprep.subr.bf16.mxu1 %v3780_v17 }
  0x54   :  { %2933 = vmatpush3.bf16.msra.mxu0 %v3786_v18 }
  0x55   :  { %2955 = vmatpush3.bf16.msra.mxu1 %v3792_v19  ;;  %2934 = vmatprep.subr.bf16.mxu0 %v3798_v20 }
  0x56   :  { %2956 = vmatprep.subr.bf16.mxu1 %v3804_v21 }
  0x58   :  { %2935 = vmatpush3.bf16.msra.mxu0 %v3810_v22 }
  0x59   :  { %2957 = vmatpush3.bf16.msra.mxu1 %v3816_v23  ;;  %2936 = vmatprep.subr.bf16.mxu0 %v3822_v24 }
  0x5a   :  { %2958 = vmatprep.subr.bf16.mxu1 %v3828_v25 }
  0x5c   :  { %2937 = vmatpush3.bf16.msra.mxu0 %v3834_v26 }
  0x5d   :  { %2959 = vmatpush3.bf16.msra.mxu1 %v3840_v27  ;;  %2938 = vmatprep.subr.bf16.mxu0 %v3846_v28 }
  0x5e   :  { %2960 = vmatprep.subr.bf16.mxu1 %v3852_v29 }
  0x60   :  { %2939 = vmatpush3.bf16.msra.mxu0 %v3858_v30 }
  0x61   :  { %2961 = vmatpush3.bf16.msra.mxu1 %v3864_v31  ;;  %2968 = vmatprep.subr.bf16.mxu0 %v3679_v0 }
  0x62   :  { %2990 = vmatprep.subr.bf16.mxu1 %v3684_v1 }
  0x63   :  { %573 = vmatmul.mubr.bf16.vlgmr.msra.gmra.mrb[8].mxu0 %v3476_v42  ;;  %v3517_v42 = vld [vmem:[%s4617_s0 + $0x10c] ss:$16 sps:$4 sm:$0xff]  }
  0x64   :  { %614 = vmatmul.mubr.bf16.vlgmr.msra.gmra.mrb[8].mxu1 %v3479_v43  ;;  %2969 = vmatpush3.bf16.msra.mxu0 %v3690_v2  ;;  %v3612_v43 = vld [vmem:[%s4616_s1] sm:$0xff]  }
  0x65   :  { %2991 = vmatpush3.bf16.msra.mxu1 %v3696_v3  ;;  %2970 = vmatprep.subr.bf16.mxu0 %v3702_v4 }
  0x66   :  { %2992 = vmatprep.subr.bf16.mxu1 %v3708_v5  ;;  %682 = vmatprep.mubr.bf16.mxu0 %v3484_v44  ;;  %v3613_v44 = vld [vmem:[%s4616_s1 + $0x80] sm:$0xff]  }
  0x67   :  { %723 = vmatprep.mubr.bf16.mxu1 %v3487_v45  ;;  %v3614_v45 = vld [vmem:[%s4616_s1 + $0x48] sm:$0xff]  }
  0x68   :  { %2971 = vmatpush3.bf16.msra.mxu0 %v3714_v6 }
  0x69   :  { %2993 = vmatpush3.bf16.msra.mxu1 %v3720_v7  ;;  %2972 = vmatprep.subr.bf16.mxu0 %v3726_v8 }
  0x6a   :  { %2994 = vmatprep.subr.bf16.mxu1 %v3732_v9 }
  0x6c   :  { %2973 = vmatpush3.bf16.msra.mxu0 %v3738_v10 }
  0x6d   :  { %2995 = vmatpush3.bf16.msra.mxu1 %v3744_v11  ;;  %2974 = vmatprep.subr.bf16.mxu0 %v3750_v12 }
  0x6e   :  { %2996 = vmatprep.subr.bf16.mxu1 %v3756_v13 }
  0x70   :  { %2975 = vmatpush3.bf16.msra.mxu0 %v3762_v14 }
  0x71   :  { %2997 = vmatpush3.bf16.msra.mxu1 %v3768_v15  ;;  %2976 = vmatprep.subr.bf16.mxu0 %v3774_v16 }
  0x72   :  { %2998 = vmatprep.subr.bf16.mxu1 %v3780_v17 }
  0x74   :  { %2977 = vmatpush3.bf16.msra.mxu0 %v3786_v18 }
  0x75   :  { %2999 = vmatpush3.bf16.msra.mxu1 %v3792_v19  ;;  %2978 = vmatprep.subr.bf16.mxu0 %v3798_v20 }
  0x76   :  { %3000 = vmatprep.subr.bf16.mxu1 %v3804_v21 }
  0x78   :  { %2979 = vmatpush3.bf16.msra.mxu0 %v3810_v22 }
  0x79   :  { %3001 = vmatpush3.bf16.msra.mxu1 %v3816_v23  ;;  %2980 = vmatprep.subr.bf16.mxu0 %v3822_v24 }
  0x7a   :  { %3002 = vmatprep.subr.bf16.mxu1 %v3828_v25 }
  0x7c   :  { %2981 = vmatpush3.bf16.msra.mxu0 %v3834_v26 }
  0x7d   :  { %3003 = vmatpush3.bf16.msra.mxu1 %v3840_v27  ;;  %2982 = vmatprep.subr.bf16.mxu0 %v3846_v28 }
  0x7e   :  { %3004 = vmatprep.subr.bf16.mxu1 %v3852_v29 }
  0x80   :  { %2983 = vmatpush3.bf16.msra.mxu0 %v3858_v30 }
  0x81   :  { %3005 = vmatpush3.bf16.msra.mxu1 %v3864_v31  ;;  %3012 = vmatprep.subr.bf16.mxu0 %v3679_v0 }
  0x82   :  { %3034 = vmatprep.subr.bf16.mxu1 %v3684_v1 }
  0x83   :  { %683 = vmatmul.mubr.bf16.vlgmr.msra.gmra.mrb[12].mxu0 %v3482_v46  ;;  %v3615_v46 = vld [vmem:[%s4616_s1 + $0xc8] sm:$0xff]  }
  0x84   :  { %724 = vmatmul.mubr.bf16.vlgmr.msra.gmra.mrb[12].mxu1 %v3485_v47  ;;  %3013 = vmatpush3.bf16.msra.mxu0 %v3690_v2  ;;  %v3616_v47 = vld [vmem:[%s4616_s1 + $0x8] sm:$0xff]  }
  0x85   :  { %3035 = vmatpush3.bf16.msra.mxu1 %v3696_v3  ;;  %3014 = vmatprep.subr.bf16.mxu0 %v3702_v4 }
  0x86   :  { %3036 = vmatprep.subr.bf16.mxu1 %v3708_v5  ;;  %792 = vmatprep.mubr.bf16.mxu0 %v3490_v48  ;;  %v3617_v48 = vld [vmem:[%s4616_s1 + $0x88] sm:$0xff]  }
  0x87   :  { %833 = vmatprep.mubr.bf16.mxu1 %v3493_v49  ;;  %v3618_v49 = vld [vmem:[%s4616_s1 + $0x50] sm:$0xff]  }
  0x88   :  { %3015 = vmatpush3.bf16.msra.mxu0 %v3714_v6 }
  0x89   :  { %3037 = vmatpush3.bf16.msra.mxu1 %v3720_v7  ;;  %3016 = vmatprep.subr.bf16.mxu0 %v3726_v8 }
  0x8a   :  { %3038 = vmatprep.subr.bf16.mxu1 %v3732_v9 }
  0x8c   :  { %3017 = vmatpush3.bf16.msra.mxu0 %v3738_v10 }
  0x8d   :  { %3039 = vmatpush3.bf16.msra.mxu1 %v3744_v11  ;;  %3018 = vmatprep.subr.bf16.mxu0 %v3750_v12 }
  0x8e   :  { %3040 = vmatprep.subr.bf16.mxu1 %v3756_v13 }
  0x90   :  { %3019 = vmatpush3.bf16.msra.mxu0 %v3762_v14 }
  0x91   :  { %3041 = vmatpush3.bf16.msra.mxu1 %v3768_v15  ;;  %3020 = vmatprep.subr.bf16.mxu0 %v3774_v16 }
  0x92   :  { %3042 = vmatprep.subr.bf16.mxu1 %v3780_v17 }
  0x94   :  { %3021 = vmatpush3.bf16.msra.mxu0 %v3786_v18 }
  0x95   :  { %3043 = vmatpush3.bf16.msra.mxu1 %v3792_v19  ;;  %3022 = vmatprep.subr.bf16.mxu0 %v3798_v20 }
  0x96   :  { %3044 = vmatprep.subr.bf16.mxu1 %v3804_v21 }
  0x98   :  { %3023 = vmatpush3.bf16.msra.mxu0 %v3810_v22 }
  0x99   :  { %3045 = vmatpush3.bf16.msra.mxu1 %v3816_v23  ;;  %3024 = vmatprep.subr.bf16.mxu0 %v3822_v24 }
  0x9a   :  { %3046 = vmatprep.subr.bf16.mxu1 %v3828_v25 }
  0x9c   :  { %3025 = vmatpush3.bf16.msra.mxu0 %v3834_v26 }
  0x9d   :  { %3047 = vmatpush3.bf16.msra.mxu1 %v3840_v27  ;;  %3026 = vmatprep.subr.bf16.mxu0 %v3846_v28 }
  0x9e   :  { %3048 = vmatprep.subr.bf16.mxu1 %v3852_v29 }
  0xa0   :  { %3027 = vmatpush3.bf16.msra.mxu0 %v3858_v30 }
  0xa1   :  { %3049 = vmatpush3.bf16.msra.mxu1 %v3864_v31  ;;  %3056 = vmatprep.subr.bf16.mxu0 %v3679_v0 }
  0xa2   :  { %3078 = vmatprep.subr.bf16.mxu1 %v3684_v1 }
  0xa3   :  { %793 = vmatmul.mubr.bf16.vlgmr.msra.gmra.mrb[16].mxu0 %v3488_v50  ;;  %v3619_v50 = vld [vmem:[%s4616_s1 + $0xd0] sm:$0xff]  }
  0xa4   :  { %834 = vmatmul.mubr.bf16.vlgmr.msra.gmra.mrb[16].mxu1 %v3491_v51  ;;  %3057 = vmatpush3.bf16.msra.mxu0 %v3690_v2  ;;  %v3620_v51 = vld [vmem:[%s4616_s1 + $0x10] sm:$0xff]  }
  0xa5   :  { %3079 = vmatpush3.bf16.msra.mxu1 %v3696_v3  ;;  %3058 = vmatprep.subr.bf16.mxu0 %v3702_v4 }
  0xa6   :  { %3080 = vmatprep.subr.bf16.mxu1 %v3708_v5  ;;  %902 = vmatprep.mubr.bf16.mxu0 %v3496_v52  ;;  %v3621_v52 = vld [vmem:[%s4616_s1 + $0x90] sm:$0xff]  }
  0xa7   :  { %943 = vmatprep.mubr.bf16.mxu1 %v3499_v53  ;;  %v3622_v53 = vld [vmem:[%s4616_s1 + $0x58] sm:$0xff]  }
  0xa8   :  { %3059 = vmatpush3.bf16.msra.mxu0 %v3714_v6 }
  0xa9   :  { %3081 = vmatpush3.bf16.msra.mxu1 %v3720_v7  ;;  %3060 = vmatprep.subr.bf16.mxu0 %v3726_v8 }
  0xaa   :  { %3082 = vmatprep.subr.bf16.mxu1 %v3732_v9 }
  0xac   :  { %3061 = vmatpush3.bf16.msra.mxu0 %v3738_v10 }
  0xad   :  { %3083 = vmatpush3.bf16.msra.mxu1 %v3744_v11  ;;  %3062 = vmatprep.subr.bf16.mxu0 %v3750_v12 }
  0xae   :  { %3084 = vmatprep.subr.bf16.mxu1 %v3756_v13 }
  0xb0   :  { %3063 = vmatpush3.bf16.msra.mxu0 %v3762_v14 }
  0xb1   :  { %3085 = vmatpush3.bf16.msra.mxu1 %v3768_v15  ;;  %3064 = vmatprep.subr.bf16.mxu0 %v3774_v16 }
  0xb2   :  { %3086 = vmatprep.subr.bf16.mxu1 %v3780_v17 }
  0xb4   :  { %3065 = vmatpush3.bf16.msra.mxu0 %v3786_v18 }
  0xb5   :  { %3087 = vmatpush3.bf16.msra.mxu1 %v3792_v19  ;;  %3066 = vmatprep.subr.bf16.mxu0 %v3798_v20 }
  0xb6   :  { %3088 = vmatprep.subr.bf16.mxu1 %v3804_v21 }
  0xb8   :  { %3067 = vmatpush3.bf16.msra.mxu0 %v3810_v22 }
  0xb9   :  { %3089 = vmatpush3.bf16.msra.mxu1 %v3816_v23  ;;  %3068 = vmatprep.subr.bf16.mxu0 %v3822_v24 }
  0xba   :  { %3090 = vmatprep.subr.bf16.mxu1 %v3828_v25 }
  0xbc   :  { %3069 = vmatpush3.bf16.msra.mxu0 %v3834_v26 }
  0xbd   :  { %3091 = vmatpush3.bf16.msra.mxu1 %v3840_v27  ;;  %3070 = vmatprep.subr.bf16.mxu0 %v3846_v28 }
  0xbe   :  { %3092 = vmatprep.subr.bf16.mxu1 %v3852_v29 }
  0xc0   :  { %3071 = vmatpush3.bf16.msra.mxu0 %v3858_v30 }
  0xc1   :  { %3093 = vmatpush3.bf16.msra.mxu1 %v3864_v31  ;;  %3100 = vmatprep.subr.bf16.mxu0 %v3679_v0 }
  0xc2   :  { %3122 = vmatprep.subr.bf16.mxu1 %v3684_v1 }
  0xc3   :  { %903 = vmatmul.mubr.bf16.vlgmr.msra.gmra.mrb[20].mxu0 %v3494_v54 }
  0xc4   :  { %944 = vmatmul.mubr.bf16.vlgmr.msra.gmra.mrb[20].mxu1 %v3497_v55  ;;  %3101 = vmatpush3.bf16.msra.mxu0 %v3690_v2 }
  0xc5   :  { %3123 = vmatpush3.bf16.msra.mxu1 %v3696_v3  ;;  %3102 = vmatprep.subr.bf16.mxu0 %v3702_v4 }
  0xc6   :  { %3124 = vmatprep.subr.bf16.mxu1 %v3708_v5  ;;  %1012 = vmatprep.mubr.bf16.mxu0 %v3502_v56 }
  0xc7   :  { %1053 = vmatprep.mubr.bf16.mxu1 %v3505_v57 }
  0xc8   :  { %3103 = vmatpush3.bf16.msra.mxu0 %v3714_v6 }
  0xc9   :  { %3125 = vmatpush3.bf16.msra.mxu1 %v3720_v7  ;;  %3104 = vmatprep.subr.bf16.mxu0 %v3726_v8 }
  0xca   :  { %3126 = vmatprep.subr.bf16.mxu1 %v3732_v9 }
  0xcc   :  { %3105 = vmatpush3.bf16.msra.mxu0 %v3738_v10 }
  0xcd   :  { %3127 = vmatpush3.bf16.msra.mxu1 %v3744_v11  ;;  %3106 = vmatprep.subr.bf16.mxu0 %v3750_v12 }
  0xce   :  { %3128 = vmatprep.subr.bf16.mxu1 %v3756_v13 }
  0xd0   :  { %3107 = vmatpush3.bf16.msra.mxu0 %v3762_v14 }
  0xd1   :  { %3129 = vmatpush3.bf16.msra.mxu1 %v3768_v15  ;;  %3108 = vmatprep.subr.bf16.mxu0 %v3774_v16 }
  0xd2   :  { %3130 = vmatprep.subr.bf16.mxu1 %v3780_v17 }
  0xd4   :  { %3109 = vmatpush3.bf16.msra.mxu0 %v3786_v18 }
  0xd5   :  { %3131 = vmatpush3.bf16.msra.mxu1 %v3792_v19  ;;  %3110 = vmatprep.subr.bf16.mxu0 %v3798_v20 }
  0xd6   :  { %3132 = vmatprep.subr.bf16.mxu1 %v3804_v21 }
  0xd8   :  { %3111 = vmatpush3.bf16.msra.mxu0 %v3810_v22 }
  0xd9   :  { %3133 = vmatpush3.bf16.msra.mxu1 %v3816_v23  ;;  %3112 = vmatprep.subr.bf16.mxu0 %v3822_v24 }
  0xda   :  { %3134 = vmatprep.subr.bf16.mxu1 %v3828_v25 }
  0xdc   :  { %3113 = vmatpush3.bf16.msra.mxu0 %v3834_v26 }
  0xdd   :  { %3135 = vmatpush3.bf16.msra.mxu1 %v3840_v27  ;;  %3114 = vmatprep.subr.bf16.mxu0 %v3846_v28 }
  0xde   :  { %3136 = vmatprep.subr.bf16.mxu1 %v3852_v29 }
  0xe0   :  { %3115 = vmatpush3.bf16.msra.mxu0 %v3858_v30 }
  0xe1   :  { %3137 = vmatpush3.bf16.msra.mxu1 %v3864_v31  ;;  %3144 = vmatprep.subr.bf16.mxu0 %v3679_v0  ;;  %v4175_v0 = vld [vmem:[%s4619_s2] ss:$0 sm:$0xff] }
  0xe2   :  { %3166 = vmatprep.subr.bf16.mxu1 %v3684_v1 }
  0xe3   :  { %1013 = vmatmul.mubr.bf16.vlgmr.msra.gmra.mrb[24].mxu0 %v3500_v58 }
  0xe4   :  { %1054 = vmatmul.mubr.bf16.vlgmr.msra.gmra.mrb[24].mxu1 %v3503_v59  ;;  %3145 = vmatpush3.bf16.msra.mxu0 %v3690_v2 }
  0xe5   :  { %3167 = vmatpush3.bf16.msra.mxu1 %v3696_v3  ;;  %3146 = vmatprep.subr.bf16.mxu0 %v3702_v4 }
  0xe6   :  { %3168 = vmatprep.subr.bf16.mxu1 %v3708_v5  ;;  %1122 = vmatprep.mubr.bf16.mxu0 %v3508_v60 }
  0xe7   :  { %1163 = vmatprep.mubr.bf16.mxu1 %v3511_v61  ;;  %v3522_v61 = vld [vmem:[%s4618_s3 + $0x30] sm:$0xff]  }
  0xe8   :  { %3147 = vmatpush3.bf16.msra.mxu0 %v3714_v6 }
  0xe9   :  { %3169 = vmatpush3.bf16.msra.mxu1 %v3720_v7  ;;  %3148 = vmatprep.subr.bf16.mxu0 %v3726_v8 }
  0xea   :  { %3170 = vmatprep.subr.bf16.mxu1 %v3732_v9 }
  0xec   :  { %3149 = vmatpush3.bf16.msra.mxu0 %v3738_v10 }
  0xed   :  { %3171 = vmatpush3.bf16.msra.mxu1 %v3744_v11  ;;  %3150 = vmatprep.subr.bf16.mxu0 %v3750_v12 }
  0xee   :  { %3172 = vmatprep.subr.bf16.mxu1 %v3756_v13 }
  0xf0   :  { %3151 = vmatpush3.bf16.msra.mxu0 %v3762_v14 }
  0xf1   :  { %3173 = vmatpush3.bf16.msra.mxu1 %v3768_v15  ;;  %3152 = vmatprep.subr.bf16.mxu0 %v3774_v16 }
  0xf2   :  { %3174 = vmatprep.subr.bf16.mxu1 %v3780_v17 }
  0xf4   :  { %3153 = vmatpush3.bf16.msra.mxu0 %v3786_v18 }
  0xf5   :  { %3175 = vmatpush3.bf16.msra.mxu1 %v3792_v19  ;;  %3154 = vmatprep.subr.bf16.mxu0 %v3798_v20 }
  0xf6   :  { %v2852_v62 = vpop.f32.mrb[0].mxu0  ;;  %3176 = vmatprep.subr.bf16.mxu1 %v3804_v21 }
  0xf7   :  { %v2874_v63 = vpop.f32.mrb[0].mxu1  ;;  %v2853_v1 = vpop.f32.mrb[1].mxu0 }
  0xf8   :  { %v2854_v2 = vadd.f32 %v2853_v1, %v2852_v62  ;;  %v2875_v3 = vpop.f32.mrb[1].mxu1  ;;  %v2855_v4 = vpop.f32.mrb[2].mxu0  ;;  %3155 = vmatpush3.bf16.msra.mxu0 %v3810_v22  ;;  %v3523_v62 = vld [vmem:[%s4618_s3 + $0x10] sm:$0xff]   ;;  %v3525_v1 = vld [vmem:[%s4618_s3 + $0x18] sm:$0xff]  }
  0xf9   :  { %v2876_v5 = vadd.f32 %v2875_v3, %v2874_v63  ;;  %v2877_v6 = vpop.f32.mrb[2].mxu1  ;;  %3177 = vmatpush3.bf16.msra.mxu1 %v3816_v23  ;;  %v2856_v7 = vpop.f32.mrb[3].mxu0  ;;  %3156 = vmatprep.subr.bf16.mxu0 %v3822_v24  ;;  %v3524_v63 = vld [vmem:[%s4618_s3 + $0x38] sm:$0xff]   ;;  %v3530_v3 = vld [vmem:[%s4618_s3 + $0x60] sm:$0xff]  }
  0xfa   :  { %v355_v8 = vadd.f32 %v2854_v2, %v4175_v0  ;;  %v2857_v9 = vadd.f32 %v2856_v7, %v2855_v4  ;;  %v2878_v10 = vpop.f32.mrb[3].mxu1  ;;  %3178 = vmatprep.subr.bf16.mxu1 %v3828_v25  ;;  %v3526_v2 = vld [vmem:[%s4618_s3 + $0x40] sm:$0xff]   ;;  %v3527_v4 = vld [vmem:[%s4618_s3 + $0x48] sm:$0xff]  }
  0xfb   :  { %v2879_v11 = vadd.f32 %v2878_v10, %v2877_v6  ;;  %v3531_v6 = vld [vmem:[%s4618_s3 + $0x68] sm:$0xff]  }
  0xfc   :  { %v396_v12 = vadd.f32 %v2876_v5, %v355_v8  ;;  %v358_v32 = vadd.f32 %v2857_v9, %v4175_v0  ;;  %3157 = vmatpush3.bf16.msra.mxu0 %v3834_v26 }
  0xfd   :  { %3179 = vmatpush3.bf16.msra.mxu1 %v3840_v27  ;;  %3158 = vmatprep.subr.bf16.mxu0 %v3846_v28 }
  0xfe   :  { %v399_v33 = vadd.f32 %v2879_v11, %v358_v32  ;;  %3180 = vmatprep.subr.bf16.mxu1 %v3852_v29  ;;  %v402_v35 = vmax.f32 %v396_v12, 0.0  ;;  %v3528_v12 = vld [vmem:[%s4618_s3 + $0x50] sm:$0xff]  }
 0x100   :  { %v403_v36 = vmax.f32 %v399_v33, 0.0  ;;  %3159 = vmatpush3.bf16.msra.mxu0 %v3858_v30 }
 0x101   :  { %3181 = vmatpush3.bf16.msra.mxu1 %v3864_v31  ;;  %3188 = vmatprep.subr.bf16.mxu0 %v3610_v38  ;;  %v3532_v38 = vld [vmem:[%s4618_s3 + $0x70] sm:$0xff]  }
 0x102   :  { %v4198_v39 = vpack.c.bf16 %v403_v36, %v402_v35  ;;  %3210 = vmatprep.subr.bf16.mxu1 %v3611_v40 }
 0x103   :  { %1123 = vmatmul.mubr.bf16.vlgmr.msra.gmra.mrb[28].mxu0 %v3506_v34 }
 0x104   :  { %1164 = vmatmul.mubr.bf16.vlgmr.msra.gmra.mrb[28].mxu1 %v3509_v37  ;;  %3189 = vmatpush3.bf16.msra.mxu0 %v3612_v43 }
 0x105   :  { %3211 = vmatpush3.bf16.msra.mxu1 %v3613_v44  ;;  %3190 = vmatprep.subr.bf16.mxu0 %v3614_v45  ;;  %v3533_v44 = vld [vmem:[%s4618_s3 + $0x78] sm:$0xff]  }
 0x106   :  { %3212 = vmatprep.subr.bf16.mxu1 %v3615_v46  ;;  %1232 = vmatprep.mubr.bf16.mxu0 %v3514_v41 }
 0x107   :  { %1273 = vmatprep.mubr.bf16.mxu1 %v3517_v42  ;;  %v3529_v42 = vld [vmem:[%s4618_s3 + $0x58] sm:$0xff]  }
 0x108   :  { %3191 = vmatpush3.bf16.msra.mxu0 %v3616_v47  ;;  %v3534_v47 = vld [vmem:[%s4618_s3 + $0x80] sm:$0xff]  }
 0x109   :  { %3213 = vmatpush3.bf16.msra.mxu1 %v3617_v48  ;;  %3192 = vmatprep.subr.bf16.mxu0 %v3618_v49  ;;  %v3535_v49 = vld [vmem:[%s4618_s3 + $0x88] sm:$0xff]  }
 0x10a   :  { %3214 = vmatprep.subr.bf16.mxu1 %v3619_v50  ;;  %v3536_v50 = vld [vmem:[%s4618_s3 + $0x90] sm:$0xff]  }
 0x10c   :  { %3193 = vmatpush3.bf16.msra.mxu0 %v3620_v51  ;;  %v3537_v51 = vld [vmem:[%s4618_s3 + $0x98] sm:$0xff]  }
 0x10d   :  { %3215 = vmatpush3.bf16.msra.mxu1 %v3621_v52  ;;  %3194 = vmatprep.subr.bf16.mxu0 %v3622_v53 }
 0x10e   :  { %3216 = vmatprep.subr.bf16.mxu1 %v3756_v13 }
 0x110   :  { %3195 = vmatpush3.bf16.msra.mxu0 %v3762_v14 }
 0x111   :  { %3217 = vmatpush3.bf16.msra.mxu1 %v3768_v15  ;;  %3196 = vmatprep.subr.bf16.mxu0 %v3774_v16 }
 0x112   :  { %3218 = vmatprep.subr.bf16.mxu1 %v3780_v17 }
 0x114   :  { %3197 = vmatpush3.bf16.msra.mxu0 %v3786_v18 }
 0x115   :  { %3219 = vmatpush3.bf16.msra.mxu1 %v3792_v19  ;;  %3198 = vmatprep.subr.bf16.mxu0 %v3798_v20 }
 0x116   :  { %v2896_v54 = vpop.f32.mrb[4].mxu0  ;;  %3220 = vmatprep.subr.bf16.mxu1 %v3804_v21 }
 0x117   :  { %v2918_v55 = vpop.f32.mrb[4].mxu1  ;;  %v2897_v56 = vpop.f32.mrb[5].mxu0 }
 0x118   :  { %v2898_v13 = vadd.f32 %v2897_v56, %v2896_v54  ;;  %v2919_v57 = vpop.f32.mrb[5].mxu1  ;;  %v2899_v14 = vpop.f32.mrb[6].mxu0  ;;  %3199 = vmatpush3.bf16.msra.mxu0 %v3810_v22 }
 0x119   :  { %v2920_v15 = vadd.f32 %v2919_v57, %v2918_v55  ;;  %v2921_v16 = vpop.f32.mrb[6].mxu1  ;;  %3221 = vmatpush3.bf16.msra.mxu1 %v3816_v23  ;;  %v2900_v17 = vpop.f32.mrb[7].mxu0  ;;  %3200 = vmatprep.subr.bf16.mxu0 %v3822_v24  ;;  %v3512_v23 = vld [vmem:[%s4617_s0 + $0x100] ss:$16 sps:$4 sm:$0xff]  }
 0x11a   :  { %v465_v18 = vadd.f32 %v2898_v13, %v4175_v0  ;;  %v2901_v19 = vadd.f32 %v2900_v17, %v2899_v14  ;;  %v2922_v20 = vpop.f32.mrb[7].mxu1  ;;  %3222 = vmatprep.subr.bf16.mxu1 %v3828_v25  ;;  %v3515_v25 = vld [vmem:[%s4617_s0 + $0x108] ss:$16 sps:$4 sm:$0xff]  }
 0x11b   :  { %v2923_v21 = vadd.f32 %v2922_v20, %v2921_v16 }
 0x11c   :  { %v506_v58 = vadd.f32 %v2920_v15, %v465_v18  ;;  %v468_v59 = vadd.f32 %v2901_v19, %v4175_v0  ;;  %3201 = vmatpush3.bf16.msra.mxu0 %v3834_v26  ;;  %v3518_v26 = vld [vmem:[%s4618_s3 + $0x20] sm:$0xff]  }
 0x11d   :  { %3223 = vmatpush3.bf16.msra.mxu1 %v3840_v27  ;;  %3202 = vmatprep.subr.bf16.mxu0 %v3846_v28  ;;  %v3623_v27 = vmov 0.0   ;;  %v3519_v28 = vld [vmem:[%s4618_s3] sm:$0xff]  }
 0x11e   :  { %v509_v22 = vadd.f32 %v2923_v21, %v468_v59  ;;  %3224 = vmatprep.subr.bf16.mxu1 %v3852_v29  ;;  %v512_v24 = vmax.f32 %v506_v58, 0.0 }
 0x120   :  { %v513_v60 = vmax.f32 %v509_v22, 0.0  ;;  %3203 = vmatpush3.bf16.msra.mxu0 %v3858_v30  ;;  %v3520_v30 = vld [vmem:[%s4618_s3 + $0x28] sm:$0xff]  }
 0x121   :  { %3225 = vmatpush3.bf16.msra.mxu1 %v3864_v31  ;;  %3321 = vmatprep.subr.bf16.mxu0 %v3623_v27  ;;  %v3521_v31 = vld [vmem:[%s4618_s3 + $0x8] sm:$0xff]  }
 0x122   :  { %v514_v29 = vpack.c.bf16 %v513_v60, %v512_v24  ;;  %3333 = vmatprep.subr.bf16.mxu1 %v3623_v27  ;;  %v3539_v60 = vld [vmem:[%s4618_s3 + $0xa8] sm:$0xff]  }
 0x123   :  { %1233 = vmatmul.mubr.bf16.vlgmr.msra.gmra.mrb[32].mxu0 %v3512_v23  ;;  %v3538_v23 = vld [vmem:[%s4618_s3 + $0xa0] sm:$0xff]  }
 0x124   :  { %1274 = vmatmul.mubr.bf16.vlgmr.msra.gmra.mrb[32].mxu1 %v3515_v25  ;;  %3322 = vmatpush3.bf16.msra.mxu0 %v3518_v26  ;;  %v3540_v25 = vld [vmem:[%s4618_s3 + $0xb0] sm:$0xff]   ;;  %v3541_v26 = vld [vmem:[%s4618_s3 + $0xb8] sm:$0xff]  }
 0x125   :  { %3334 = vmatpush3.bf16.msra.mxu1 %v3519_v28  ;;  %3323 = vmatprep.subr.bf16.mxu0 %v3623_v27 }
 0x126   :  { %3335 = vmatprep.subr.bf16.mxu1 %v3623_v27  ;;  %3329 = vmatprep.mubr.msk.bf16.mxu0 %vm3624_vm0, %v3623_v27 }
 0x127   :  { %3341 = vmatprep.mubr.msk.bf16.mxu1 %vm3624_vm0, %v3623_v27 }
 0x128   :  { %3324 = vmatpush3.bf16.msra.mxu0 %v3520_v30 }
 0x129   :  { %3336 = vmatpush3.bf16.msra.mxu1 %v3521_v31  ;;  %3325 = vmatprep.subr.bf16.mxu0 %v3623_v27 }
 0x12a   :  { %3337 = vmatprep.subr.bf16.mxu1 %v3623_v27 }
 0x12c   :  { %3326 = vmatpush3.bf16.msra.mxu0 %v3522_v61 }
 0x12d   :  { %3338 = vmatpush3.bf16.msra.mxu1 %v3523_v62  ;;  %3327 = vmatprep.subr.bf16.mxu0 %v3623_v27 }
 0x12e   :  { %3339 = vmatprep.subr.bf16.mxu1 %v3623_v27 }
 0x130   :  { %3328 = vmatpush3.bf16.msra.mxu0 %v3524_v63 }
 0x131   :  { %3340 = vmatpush3.bf16.msra.mxu1 %v3525_v1  ;;  %3345 = vmatprep.subr.bf16.mxu0 %v3623_v27 }
 0x132   :  { %3357 = vmatprep.subr.bf16.mxu1 %v3623_v27 }
 0x133   :  { %3330 = vmatmul.mubr.msk.bf16.vlgmr.msra.gmra.mrb[36].mxu0 %vm1327_vm1, %v514_v29 }
 0x134   :  { %3342 = vmatmul.mubr.msk.bf16.vlgmr.msra.gmra.mrb[36].mxu1 %vm1327_vm1, %v4198_v39  ;;  %3346 = vmatpush3.bf16.msra.mxu0 %v3526_v2 }
 0x135   :  { %3347 = vmatprep.subr.bf16.mxu0 %v3623_v27  ;;  %3353 = vmatprep.mubr.msk.bf16.mxu0 %vm3624_vm0, %v3623_v27 }
 0x136   :  { %v2940_v5 = vpop.f32.mrb[8].mxu0  ;;  %3358 = vmatpush3.bf16.msra.mxu1 %v3530_v3  ;;  %3365 = vmatprep.mubr.msk.bf16.mxu1 %vm3624_vm0, %v3623_v27 }
 0x137   :  { %v2962_v7 = vpop.f32.mrb[8].mxu1  ;;  %v2941_v8 = vpop.f32.mrb[9].mxu0  ;;  %3359 = vmatprep.subr.bf16.mxu1 %v3623_v27 }
 0x138   :  { %v2942_v9 = vadd.f32 %v2941_v8, %v2940_v5  ;;  %v2963_v10 = vpop.f32.mrb[9].mxu1  ;;  %v2943_v11 = vpop.f32.mrb[10].mxu0  ;;  %3348 = vmatpush3.bf16.msra.mxu0 %v3527_v4 }
 0x139   :  { %v2964_v32 = vadd.f32 %v2963_v10, %v2962_v7  ;;  %v2965_v33 = vpop.f32.mrb[10].mxu1  ;;  %v2944_v34 = vpop.f32.mrb[11].mxu0  ;;  %3349 = vmatprep.subr.bf16.mxu0 %v3623_v27 }
 0x13a   :  { %v575_v35 = vadd.f32 %v2942_v9, %v4175_v0  ;;  %v2945_v36 = vadd.f32 %v2944_v34, %v2943_v11  ;;  %v2966_v37 = vpop.f32.mrb[11].mxu1  ;;  %3360 = vmatpush3.bf16.msra.mxu1 %v3531_v6  ;;  %v3544_v34 = vld [vmem:[%s4618_s3 + $0xd0] sm:$0xff]  }
 0x13b   :  { %v2967_v39 = vadd.f32 %v2966_v37, %v2965_v33  ;;  %3361 = vmatprep.subr.bf16.mxu1 %v3623_v27  ;;  %v3543_v33 = vld [vmem:[%s4618_s3 + $0xc8] sm:$0xff]  }
 0x13c   :  { %v616_v40 = vadd.f32 %v2964_v32, %v575_v35  ;;  %v578_v41 = vadd.f32 %v2945_v36, %v4175_v0  ;;  %3350 = vmatpush3.bf16.msra.mxu0 %v3528_v12  ;;  %v3542_v12 = vld [vmem:[%s4618_s3 + $0xc0] sm:$0xff]   ;;  %v3545_v35 = vld [vmem:[%s4618_s3 + $0xd8] sm:$0xff]  }
 0x13d   :  { %3351 = vmatprep.subr.bf16.mxu0 %v3623_v27 }
 0x13e   :  { %v619_v43 = vadd.f32 %v2967_v39, %v578_v41  ;;  %3362 = vmatpush3.bf16.msra.mxu1 %v3532_v38  ;;  %v622_v45 = vmax.f32 %v616_v40, 0.0 }
 0x13f   :  { %3363 = vmatprep.subr.bf16.mxu1 %v3623_v27 }
 0x140   :  { %v623_v46 = vmax.f32 %v619_v43, 0.0  ;;  %3352 = vmatpush3.bf16.msra.mxu0 %v3529_v42 }
 0x141   :  { %3369 = vmatprep.subr.bf16.mxu0 %v3623_v27 }
 0x142   :  { %v624_v48 = vpack.c.bf16 %v623_v46, %v622_v45  ;;  %3364 = vmatpush3.bf16.msra.mxu1 %v3533_v44 }
 0x143   :  { %3381 = vmatprep.subr.bf16.mxu1 %v3623_v27 }
 0x144   :  { %3354 = vmatmul.mubr.msk.bf16.vlgmr.msra.gmra.mrb[40].mxu0 %vm1327_vm1, %v624_v48 }
 0x145   :  { %3370 = vmatpush3.bf16.msra.mxu0 %v3534_v47  ;;  %3377 = vmatprep.mubr.msk.bf16.mxu0 %vm3624_vm0, %v3623_v27 }
 0x146   :  { %3371 = vmatprep.subr.bf16.mxu0 %v3623_v27 }
 0x149   :  { %3372 = vmatpush3.bf16.msra.mxu0 %v3535_v49 }
 0x14a   :  { %3373 = vmatprep.subr.bf16.mxu0 %v3623_v27 }
 0x14d   :  { %3374 = vmatpush3.bf16.msra.mxu0 %v3536_v50 }
 0x14e   :  { %3375 = vmatprep.subr.bf16.mxu0 %v3623_v27 }
 0x151   :  { %3376 = vmatpush3.bf16.msra.mxu0 %v3537_v51 }
 0x152   :  { %3393 = vmatprep.subr.bf16.mxu0 %v3623_v27 }
 0x156   :  { %v2984_v52 = vpop.f32.mrb[12].mxu0 }
 0x157   :  { %v3006_v53 = vpop.f32.mrb[12].mxu1  ;;  %v2985_v54 = vpop.f32.mrb[13].mxu0 }
 0x158   :  { %v2986_v55 = vadd.f32 %v2985_v54, %v2984_v52  ;;  %v3007_v56 = vpop.f32.mrb[13].mxu1  ;;  %v2987_v13 = vpop.f32.mrb[14].mxu0  ;;  %v3546_v54 = vld [vmem:[%s4618_s3 + $0xe0] sm:$0xff]  }
 0x159   :  { %v3008_v57 = vadd.f32 %v3007_v56, %v3006_v53  ;;  %v3009_v14 = vpop.f32.mrb[14].mxu1  ;;  %v2988_v15 = vpop.f32.mrb[15].mxu0  ;;  %v3547_v56 = vld [vmem:[%s4618_s3 + $0xe8] sm:$0xff]  }
 0x15a   :  { %v685_v16 = vadd.f32 %v2986_v55, %v4175_v0  ;;  %v2989_v17 = vadd.f32 %v2988_v15, %v2987_v13  ;;  %v3010_v18 = vpop.f32.mrb[15].mxu1  ;;  %v3548_v13 = vld [vmem:[%s4618_s3 + $0xf0] sm:$0xff]  }
 0x15b   :  { %v3011_v19 = vadd.f32 %v3010_v18, %v3009_v14 }
 0x15c   :  { %v726_v20 = vadd.f32 %v3008_v57, %v685_v16  ;;  %v688_v21 = vadd.f32 %v2989_v17, %v4175_v0  ;;  %v3549_v57 = vld [vmem:[%s4618_s3 + $0xf8] sm:$0xff]  }
 0x15e   :  { %v729_v58 = vadd.f32 %v3011_v19, %v688_v21  ;;  %v732_v59 = vmax.f32 %v726_v20, 0.0 }
 0x160   :  { %v733_v22 = vmax.f32 %v729_v58, 0.0 }
 0x162   :  { %v734_v24 = vpack.c.bf16 %v733_v22, %v732_v59 }
 0x164   :  { %3366 = vmatmul.mubr.msk.bf16.vlgmr.msra.gmra.mrb[40].mxu1 %vm1327_vm1, %v734_v24 }
 0x165   :  { %3382 = vmatpush3.bf16.msra.mxu1 %v3538_v23  ;;  %3389 = vmatprep.mubr.msk.bf16.mxu1 %vm3624_vm0, %v3623_v27 }
 0x166   :  { %3383 = vmatprep.subr.bf16.mxu1 %v3623_v27 }
 0x169   :  { %3384 = vmatpush3.bf16.msra.mxu1 %v3539_v60 }
 0x16a   :  { %3385 = vmatprep.subr.bf16.mxu1 %v3623_v27 }
 0x16d   :  { %3386 = vmatpush3.bf16.msra.mxu1 %v3540_v25 }
 0x16e   :  { %3387 = vmatprep.subr.bf16.mxu1 %v3623_v27 }
 0x171   :  { %3388 = vmatpush3.bf16.msra.mxu1 %v3541_v26 }
 0x172   :  { %3405 = vmatprep.subr.bf16.mxu1 %v3623_v27 }
 0x176   :  { %v3028_v28 = vpop.f32.mrb[16].mxu0 }
 0x177   :  { %v3050_v29 = vpop.f32.mrb[16].mxu1  ;;  %v3029_v30 = vpop.f32.mrb[17].mxu0 }
 0x178   :  { %v3030_v31 = vadd.f32 %v3029_v30, %v3028_v28  ;;  %v3051_v61 = vpop.f32.mrb[17].mxu1  ;;  %v3031_v62 = vpop.f32.mrb[18].mxu0  ;;  %v3550_v30 = vld [vmem:[%s4618_s3 + $0x100] sm:$0xff]  }
 0x179   :  { %v3052_v63 = vadd.f32 %v3051_v61, %v3050_v29  ;;  %v3053_v1 = vpop.f32.mrb[18].mxu1  ;;  %v3032_v2 = vpop.f32.mrb[19].mxu0  ;;  %v3551_v61 = vld [vmem:[%s4618_s3 + $0x108] sm:$0xff]  }
 0x17a   :  { %v795_v3 = vadd.f32 %v3030_v31, %v4175_v0  ;;  %v3033_v4 = vadd.f32 %v3032_v2, %v3031_v62  ;;  %v3054_v5 = vpop.f32.mrb[19].mxu1  ;;  %v3552_v62 = vld [vmem:[%s4618_s3 + $0x110] sm:$0xff]  }
 0x17b   :  { %v3055_v6 = vadd.f32 %v3054_v5, %v3053_v1 }
 0x17c   :  { %v836_v7 = vadd.f32 %v3052_v63, %v795_v3  ;;  %v798_v8 = vadd.f32 %v3033_v4, %v4175_v0  ;;  %v3553_v63 = vld [vmem:[%s4618_s3 + $0x118] sm:$0xff]  }
 0x17e   :  { %v839_v9 = vadd.f32 %v3055_v6, %v798_v8  ;;  %v842_v10 = vmax.f32 %v836_v7, 0.0 }
 0x180   :  { %v843_v11 = vmax.f32 %v839_v9, 0.0 }
 0x182   :  { %v844_v32 = vpack.c.bf16 %v843_v11, %v842_v10 }
 0x184   :  { %3378 = vmatmul.mubr.msk.bf16.vlgmr.msra.gmra.mrb[44].mxu0 %vm1327_vm1, %v844_v32 }
 0x185   :  { %3394 = vmatpush3.bf16.msra.mxu0 %v3542_v12  ;;  %3401 = vmatprep.mubr.msk.bf16.mxu0 %vm3624_vm0, %v3623_v27 }
 0x186   :  { %3395 = vmatprep.subr.bf16.mxu0 %v3623_v27 }
 0x189   :  { %3396 = vmatpush3.bf16.msra.mxu0 %v3543_v33 }
 0x18a   :  { %3397 = vmatprep.subr.bf16.mxu0 %v3623_v27 }
 0x18d   :  { %3398 = vmatpush3.bf16.msra.mxu0 %v3544_v34 }
 0x18e   :  { %3399 = vmatprep.subr.bf16.mxu0 %v3623_v27 }
 0x191   :  { %3400 = vmatpush3.bf16.msra.mxu0 %v3545_v35 }
 0x192   :  { %3417 = vmatprep.subr.bf16.mxu0 %v3623_v27 }
 0x196   :  { %v3072_v36 = vpop.f32.mrb[20].mxu0 }
 0x197   :  { %v3094_v37 = vpop.f32.mrb[20].mxu1  ;;  %v3073_v38 = vpop.f32.mrb[21].mxu0 }
 0x198   :  { %v3074_v39 = vadd.f32 %v3073_v38, %v3072_v36  ;;  %v3095_v40 = vpop.f32.mrb[21].mxu1  ;;  %v3075_v41 = vpop.f32.mrb[22].mxu0 }
 0x199   :  { %v3096_v42 = vadd.f32 %v3095_v40, %v3094_v37  ;;  %v3097_v43 = vpop.f32.mrb[22].mxu1  ;;  %v3076_v44 = vpop.f32.mrb[23].mxu0 }
 0x19a   :  { %v905_v45 = vadd.f32 %v3074_v39, %v4175_v0  ;;  %v3077_v46 = vadd.f32 %v3076_v44, %v3075_v41  ;;  %v3098_v47 = vpop.f32.mrb[23].mxu1 }
 0x19b   :  { %v3099_v48 = vadd.f32 %v3098_v47, %v3097_v43 }
 0x19c   :  { %v946_v49 = vadd.f32 %v3096_v42, %v905_v45  ;;  %v908_v50 = vadd.f32 %v3077_v46, %v4175_v0 }
 0x19e   :  { %v949_v51 = vadd.f32 %v3099_v48, %v908_v50  ;;  %v952_v52 = vmax.f32 %v946_v49, 0.0 }
 0x1a0   :  { %v953_v53 = vmax.f32 %v949_v51, 0.0 }
 0x1a2   :  { %v954_v55 = vpack.c.bf16 %v953_v53, %v952_v52 }
 0x1a4   :  { %3390 = vmatmul.mubr.msk.bf16.vlgmr.msra.gmra.mrb[44].mxu1 %vm1327_vm1, %v954_v55 }
 0x1a5   :  { %3406 = vmatpush3.bf16.msra.mxu1 %v3546_v54  ;;  %3413 = vmatprep.mubr.msk.bf16.mxu1 %vm3624_vm0, %v3623_v27 }
 0x1a6   :  { %3407 = vmatprep.subr.bf16.mxu1 %v3623_v27 }
 0x1a9   :  { %3408 = vmatpush3.bf16.msra.mxu1 %v3547_v56 }
 0x1aa   :  { %3409 = vmatprep.subr.bf16.mxu1 %v3623_v27 }
 0x1ad   :  { %3410 = vmatpush3.bf16.msra.mxu1 %v3548_v13 }
 0x1ae   :  { %3411 = vmatprep.subr.bf16.mxu1 %v3623_v27 }
 0x1b1   :  { %3412 = vmatpush3.bf16.msra.mxu1 %v3549_v57 }
 0x1b6   :  { %v3116_v14 = vpop.f32.mrb[24].mxu0 }
 0x1b7   :  { %v3138_v15 = vpop.f32.mrb[24].mxu1  ;;  %v3117_v16 = vpop.f32.mrb[25].mxu0 }
 0x1b8   :  { %v3118_v17 = vadd.f32 %v3117_v16, %v3116_v14  ;;  %v3139_v18 = vpop.f32.mrb[25].mxu1  ;;  %v3119_v19 = vpop.f32.mrb[26].mxu0 }
 0x1b9   :  { %v3140_v20 = vadd.f32 %v3139_v18, %v3138_v15  ;;  %v3141_v21 = vpop.f32.mrb[26].mxu1  ;;  %v3120_v58 = vpop.f32.mrb[27].mxu0 }
 0x1ba   :  { %v1015_v59 = vadd.f32 %v3118_v17, %v4175_v0  ;;  %v3121_v22 = vadd.f32 %v3120_v58, %v3119_v19  ;;  %v3142_v23 = vpop.f32.mrb[27].mxu1 }
 0x1bb   :  { %v3143_v24 = vadd.f32 %v3142_v23, %v3141_v21 }
 0x1bc   :  { %v1056_v60 = vadd.f32 %v3140_v20, %v1015_v59  ;;  %v1018_v25 = vadd.f32 %v3121_v22, %v4175_v0 }
 0x1be   :  { %v1059_v26 = vadd.f32 %v3143_v24, %v1018_v25  ;;  %v1062_v28 = vmax.f32 %v1056_v60, 0.0 }
 0x1c0   :  { %v1063_v29 = vmax.f32 %v1059_v26, 0.0 }
 0x1c2   :  { %v1064_v31 = vpack.c.bf16 %v1063_v29, %v1062_v28 }
 0x1c4   :  { %3402 = vmatmul.mubr.msk.bf16.vlgmr.msra.gmra.mrb[48].mxu0 %vm1327_vm1, %v1064_v31  ;;  %v3554_v31 = vld [vmem:[%s4620_s5] ss:$16 sps:$4 sm:$0xff]  }
 0x1c5   :  { %3418 = vmatpush3.bf16.msra.mxu0 %v3550_v30  ;;  %3425 = vmatprep.mubr.msk.bf16.mxu0 %vm3624_vm0, %v3623_v27 }
 0x1c6   :  { %3419 = vmatprep.subr.bf16.mxu0 %v3623_v27 }
 0x1c9   :  { %3420 = vmatpush3.bf16.msra.mxu0 %v3551_v61  ;;  %v3556_v61 = vld [vmem:[%s4620_s5 + $0x4] ss:$16 sps:$4 sm:$0xff]  }
 0x1ca   :  { %3421 = vmatprep.subr.bf16.mxu0 %v3623_v27  ;;  %2125 = vmatprep.subr.bf16.mxu1 %v3556_v61  ;;  %v3590_v61 = vld [vmem:[%s4621_s7 + $0x58] sm:$0xff]  }
 0x1cd   :  { %3422 = vmatpush3.bf16.msra.mxu0 %v3552_v62  ;;  %v3557_v62 = vld [vmem:[%s4620_s5 + $0x8] ss:$16 sps:$4 sm:$0xff]  }
 0x1ce   :  { %3423 = vmatprep.subr.bf16.mxu0 %v3623_v27 }
 0x1d1   :  { %3424 = vmatpush3.bf16.msra.mxu0 %v3553_v63  ;;  %v3559_v63 = vld [vmem:[%s4620_s5 + $0xc] ss:$16 sps:$4 sm:$0xff]  }
 0x1d2   :  { %2168 = vmatprep.subr.bf16.mxu0 %v3559_v63  ;;  %v3592_v63 = vld [vmem:[%s4621_s7 + $0x18] sm:$0xff]  }
 0x1d6   :  { %v3160_v1 = vpop.f32.mrb[28].mxu0 }
 0x1d7   :  { %v3182_v2 = vpop.f32.mrb[28].mxu1  ;;  %v3161_v3 = vpop.f32.mrb[29].mxu0 }
 0x1d8   :  { %v3162_v4 = vadd.f32 %v3161_v3, %v3160_v1  ;;  %v3183_v5 = vpop.f32.mrb[29].mxu1  ;;  %v3163_v6 = vpop.f32.mrb[30].mxu0  ;;  %v3562_v1 = vld [vmem:[%s4620_s5 + $0x24] ss:$16 sps:$4 sm:$0xff]   ;;  %v3563_v3 = vld [vmem:[%s4620_s5 + $0x28] ss:$16 sps:$4 sm:$0xff]  }
 0x1d9   :  { %v3184_v7 = vadd.f32 %v3183_v5, %v3182_v2  ;;  %v3185_v8 = vpop.f32.mrb[30].mxu1  ;;  %v3164_v9 = vpop.f32.mrb[31].mxu0  ;;  %v3560_v2 = vld [vmem:[%s4620_s5 + $0x20] ss:$16 sps:$4 sm:$0xff]  }
 0x1da   :  { %v1125_v10 = vadd.f32 %v3162_v4, %v4175_v0  ;;  %v3165_v11 = vadd.f32 %v3164_v9, %v3163_v6  ;;  %v3186_v12 = vpop.f32.mrb[31].mxu1  ;;  %v3565_v4 = vld [vmem:[%s4620_s5 + $0x2c] ss:$16 sps:$4 sm:$0xff]   ;;  %v3568_v9 = vld [vmem:[%s4620_s5 + $0x44] ss:$16 sps:$4 sm:$0xff]  }
 0x1db   :  { %v3187_v32 = vadd.f32 %v3186_v12, %v3185_v8 }
 0x1dc   :  { %v1166_v33 = vadd.f32 %v3184_v7, %v1125_v10  ;;  %v1128_v34 = vadd.f32 %v3165_v11, %v4175_v0  ;;  %v3571_v10 = vld [vmem:[%s4620_s5 + $0x4c] ss:$16 sps:$4 sm:$0xff]  }
 0x1de   :  { %v1169_v35 = vadd.f32 %v3187_v32, %v1128_v34  ;;  %v1172_v27 = vmax.f32 %v1166_v33, 0.0  ;;  %v3566_v32 = vld [vmem:[%s4620_s5 + $0x40] ss:$16 sps:$4 sm:$0xff]   ;;  %v3569_v33 = vld [vmem:[%s4620_s5 + $0x48] ss:$16 sps:$4 sm:$0xff]  }
 0x1df   :  { %v3574_v34 = vld [vmem:[%s4620_s5 + $0x64] ss:$16 sps:$4 sm:$0xff]  }
 0x1e0   :  { %v1173_v36 = vmax.f32 %v1169_v35, 0.0  ;;  %v3577_v35 = vld [vmem:[%s4620_s5 + $0x6c] ss:$16 sps:$4 sm:$0xff]  }
 0x1e2   :  { %v1174_v37 = vpack.c.bf16 %v1173_v36, %v1172_v27  ;;  %v3572_v27 = vld [vmem:[%s4620_s5 + $0x60] ss:$16 sps:$4 sm:$0xff]   ;;  %v3575_v36 = vld [vmem:[%s4620_s5 + $0x68] ss:$16 sps:$4 sm:$0xff]  }
 0x1e4   :  { %3414 = vmatmul.mubr.msk.bf16.vlgmr.msra.gmra.mrb[48].mxu1 %vm1327_vm1, %v1174_v37  ;;  %v3625_v37 = vmov 0  }
 0x1e5   :  { %2126 = vmatpush1.bf16.msra.mxu1 %v3554_v31  ;;  %2157 = vmatprep.mubr.bf16.mxu1 %v3625_v37  ;;  %v3589_v31 = vld [vmem:[%s4621_s7 + $0x90] sm:$0xff]  }
 0x1e6   :  { %2127 = vmatprep.subr.bf16.mxu1 %v3562_v1  ;;  %v3593_v1 = vld [vmem:[%s4621_s7 + $0x98] sm:$0xff]  }
 0x1e9   :  { %2128 = vmatpush1.bf16.msra.mxu1 %v3560_v2  ;;  %v3594_v2 = vld [vmem:[%s4621_s7 + $0x60] sm:$0xff]  }
 0x1ea   :  { %2129 = vmatprep.subr.bf16.mxu1 %v3568_v9  ;;  %v3601_v9 = vld [vmem:[%s4621_s7 + $0xa8] sm:$0xff]  }
 0x1ed   :  { %2130 = vmatpush1.bf16.msra.mxu1 %v3566_v32  ;;  %v3605_v32 = vld [vmem:[%s4621_s7 + $0xb0] sm:$0xff]  }
 0x1ee   :  { %2131 = vmatprep.subr.bf16.mxu1 %v3574_v34  ;;  %v3607_v34 = vld [vmem:[%s4621_s7 + $0xf8] sm:$0xff]  }
 0x1f1   :  { %2132 = vmatpush1.bf16.msra.mxu1 %v3572_v27  ;;  %v3609_v27 = vld [vmem:[%s4621_s7 + $0xb8] sm:$0xff]  }
 0x1f6   :  { %v3204_v38 = vpop.f32.mrb[32].mxu0 }
 0x1f7   :  { %v3226_v39 = vpop.f32.mrb[32].mxu1  ;;  %v3205_v40 = vpop.f32.mrb[33].mxu0 }
 0x1f8   :  { %v3206_v41 = vadd.f32 %v3205_v40, %v3204_v38  ;;  %v3227_v42 = vpop.f32.mrb[33].mxu1  ;;  %v3207_v43 = vpop.f32.mrb[34].mxu0  ;;  %v3578_v38 = vld [vmem:[%s4621_s7 + $0x40] sm:$0xff]  }
 0x1f9   :  { %v3228_v44 = vadd.f32 %v3227_v42, %v3226_v39  ;;  %v3229_v45 = vpop.f32.mrb[34].mxu1  ;;  %v3208_v46 = vpop.f32.mrb[35].mxu0  ;;  %v3579_v39 = vld [vmem:[%s4621_s7 + $0xc0] sm:$0xff]   ;;  %3277 = vmatprep.subr.bf16.mxu1 %v3578_v38 }
 0x1fa   :  { %v1235_v47 = vadd.f32 %v3206_v41, %v4175_v0  ;;  %v3209_v48 = vadd.f32 %v3208_v46, %v3207_v43  ;;  %v3230_v49 = vpop.f32.mrb[35].mxu1 }
 0x1fb   :  { %v3231_v50 = vadd.f32 %v3230_v49, %v3229_v45 }
 0x1fc   :  { %v1276_v51 = vadd.f32 %v3228_v44, %v1235_v47  ;;  %v1238_v52 = vadd.f32 %v3209_v48, %v4175_v0 }
 0x1fe   :  { %v1279_v53 = vadd.f32 %v3231_v50, %v1238_v52  ;;  %v1282_v54 = vmax.f32 %v1276_v51, 0.0 }
 0x200   :  { %v1283_v55 = vmax.f32 %v1279_v53, 0.0 }
 0x202   :  { %v1284_v56 = vpack.c.bf16 %v1283_v55, %v1282_v54 }
 0x204   :  { %3426 = vmatmul.mubr.msk.bf16.vlgmr.msra.gmra.mrb[52].mxu0 %vm1327_vm1, %v1284_v56 }
 0x205   :  { %2169 = vmatpush1.bf16.msra.mxu0 %v3557_v62  ;;  %2200 = vmatprep.mubr.bf16.mxu0 %v3625_v37  ;;  %v3591_v62 = vld [vmem:[%s4621_s7 + $0xd8] sm:$0xff]  }
 0x206   :  { %v1365_v13 = vpop.f32.mrb[36].mxu0  ;;  %2170 = vmatprep.subr.bf16.mxu0 %v3565_v4  ;;  %v3596_v4 = vld [vmem:[%s4621_s7 + $0x20] sm:$0xff]  }
 0x207   :  { %v1433_v57 = vpop.f32.mrb[36].mxu1  ;;  %v3331_v14 = vpop.f32.mrb[37].mxu0 }
 0x208   :  { %v1434_v15 = vadd.f32 %v1433_v57, %v1365_v13  ;;  %v3343_v16 = vpop.f32.mrb[37].mxu1  ;;  %v1368_v17 = vpop.f32.mrb[38].mxu0  ;;  %v2784_v57 = vld [vmem:[%s4622_s4] ss:$0 sm:$0xff] }
 0x209   :  { %v1436_v18 = vpop.f32.mrb[38].mxu1  ;;  %v3332_v19 = vpop.f32.mrb[39].mxu0  ;;  %2171 = vmatpush1.bf16.msra.mxu0 %v3563_v3  ;;  %v3595_v3 = vld [vmem:[%s4621_s7 + $0xe0] sm:$0xff]  }
 0x20a   :  { %v1437_v20 = vadd.f32 %v1436_v18, %v1368_v17  ;;  %v3344_v21 = vpop.f32.mrb[39].mxu1  ;;  %2172 = vmatprep.subr.bf16.mxu0 %v3571_v10  ;;  %v3602_v10 = vld [vmem:[%s4621_s7 + $0x70] sm:$0xff]  }
 0x20d   :  { %2173 = vmatpush1.bf16.msra.mxu0 %v3569_v33  ;;  %v3606_v33 = vld [vmem:[%s4621_s7 + $0x78] sm:$0xff]  }
 0x20e   :  { %2174 = vmatprep.subr.bf16.mxu0 %v3577_v35  ;;  %v3608_v35 = vld [vmem:[%s4621_s7 + $0x38] sm:$0xff]  }
 0x211   :  { %2175 = vmatpush1.bf16.msra.mxu0 %v3575_v36  ;;  %v2022_v36 = vlaneseq }
 0x212   :  { %3299 = vmatprep.subr.bf16.mxu0 %v3579_v39 }
 0x213   :  { %v2023_v37 = vshrl.u32 %v2022_v36, 7 }
 0x215   :  { %v2024_v38 = vsub.s32 0, %v2023_v37  ;;  %v2032_v39 = vsub.s32 2, %v2023_v37 }
 0x217   :  { %v1510_v58 = vpop.f32.mrb[40].mxu0 }
 0x218   :  { %v1517_v59 = vadd.f32 %v1510_v58, %v1434_v15  ;;  %v3355_v22 = vpop.f32.mrb[41].mxu0 }
 0x219   :  { %v1513_v0 = vpop.f32.mrb[42].mxu0  ;;  %v3580_v22 = vld [vmem:[%s4621_s7] sm:$0xff]  }
 0x21a   :  { %v1518_v23 = vadd.f32 %v1513_v0, %v1437_v20  ;;  %v3356_v24 = vpop.f32.mrb[43].mxu0  ;;  %v3581_v0 = vld [vmem:[%s4621_s7 + $0x80] sm:$0xff]  }
 0x21b   :  { %v3582_v24 = vld [vmem:[%s4621_s7 + $0x48] sm:$0xff]  }
 0x237   :  { %v1589_v60 = vpop.f32.mrb[40].mxu1 }
 0x238   :  { %v1596_v25 = vadd.f32 %v1589_v60, %v1517_v59  ;;  %v3367_v26 = vpop.f32.mrb[41].mxu1  ;;  %v3583_v60 = vld [vmem:[%s4621_s7 + $0xc8] sm:$0xff]  }
 0x239   :  { %v1592_v28 = vpop.f32.mrb[42].mxu1  ;;  %v3585_v26 = vld [vmem:[%s4621_s7 + $0x88] sm:$0xff]  }
 0x23a   :  { %v1597_v29 = vadd.f32 %v1592_v28, %v1518_v23  ;;  %v3368_v30 = vpop.f32.mrb[43].mxu1  ;;  %v3586_v28 = vld [vmem:[%s4621_s7 + $0x50] sm:$0xff]  }
 0x23b   :  { %v3588_v30 = vld [vmem:[%s4621_s7 + $0x10] sm:$0xff]  }
 0x257   :  { %v1668_v5 = vpop.f32.mrb[44].mxu0 }
 0x258   :  { %v1675_v6 = vadd.f32 %v1668_v5, %v1596_v25  ;;  %v3379_v7 = vpop.f32.mrb[45].mxu0  ;;  %v3584_v25 = vld [vmem:[%s4621_s7 + $0x8] sm:$0xff]   ;;  %v3597_v5 = vld [vmem:[%s4621_s7 + $0xa0] sm:$0xff]  }
 0x259   :  { %v1671_v8 = vpop.f32.mrb[46].mxu0  ;;  %v3599_v7 = vld [vmem:[%s4621_s7 + $0xe8] sm:$0xff]  }
 0x25a   :  { %v1676_v11 = vadd.f32 %v1671_v8, %v1597_v29  ;;  %v3380_v12 = vpop.f32.mrb[47].mxu0  ;;  %v3587_v29 = vld [vmem:[%s4621_s7 + $0xd0] sm:$0xff]   ;;  %v3600_v8 = vld [vmem:[%s4621_s7 + $0x28] sm:$0xff]  }
 0x25b   :  { %v3604_v12 = vld [vmem:[%s4621_s7 + $0x30] sm:$0xff]  }
 0x277   :  { %v1747_v40 = vpop.f32.mrb[44].mxu1 }
 0x278   :  { %v1754_v41 = vadd.f32 %v1747_v40, %v1675_v6  ;;  %v3391_v42 = vpop.f32.mrb[45].mxu1  ;;  %v3598_v6 = vld [vmem:[%s4621_s7 + $0x68] sm:$0xff]   ;;  %v2020_v40 = vld [vmem:[%s4623_s6] sm:$0xf] }
 0x279   :  { %v1750_v43 = vpop.f32.mrb[46].mxu1  ;;  %v2036_v42 = vsub.s32 3, %v2023_v37 }
 0x27a   :  { %v1755_v44 = vadd.f32 %v1750_v43, %v1676_v11  ;;  %v3392_v45 = vpop.f32.mrb[47].mxu1  ;;  %v3603_v11 = vld [vmem:[%s4621_s7 + $0xf0] sm:$0xff]   ;;  %v2025_v43 = vrot.slane %v2020_v40, %v2024_v38 }
 0x297   :  { %v1826_v46 = vpop.f32.mrb[48].mxu0 }
 0x298   :  { %v1833_v47 = vadd.f32 %v1826_v46, %v1754_v41  ;;  %v3403_v48 = vpop.f32.mrb[49].mxu0  ;;  %v2028_v41 = vsub.s32 1, %v2023_v37  ;;  %v2037_v46 = vrot.slane %v2020_v40, %v2036_v42 }
 0x299   :  { %v1829_v49 = vpop.f32.mrb[50].mxu0 }
 0x29a   :  { %v1834_v50 = vadd.f32 %v1829_v49, %v1755_v44  ;;  %v3404_v51 = vpop.f32.mrb[51].mxu0  ;;  %v2033_v44 = vrot.slane %v2020_v40, %v2032_v39  ;;  %v2029_v45 = vrot.slane %v2020_v40, %v2028_v41 }
 0x2b7   :  { %v1905_v52 = vpop.f32.mrb[48].mxu1 }
 0x2b8   :  { %v1912_v53 = vadd.f32 %v1905_v52, %v1833_v47  ;;  %v3415_v54 = vpop.f32.mrb[49].mxu1 }
 0x2b9   :  { %v1908_v55 = vpop.f32.mrb[50].mxu1 }
 0x2ba   :  { %v1913_v56 = vadd.f32 %v1908_v55, %v1834_v50  ;;  %v3416_v13 = vpop.f32.mrb[51].mxu1 }
 0x2d7   :  { %v1984_v14 = vpop.f32.mrb[52].mxu0 }
 0x2d8   :  { %v1991_v15 = vadd.f32 %v1984_v14, %v1912_v53  ;;  %v3427_v16 = vpop.f32.mrb[53].mxu0 }
 0x2d9   :  { %v1987_v17 = vpop.f32.mrb[54].mxu0 }
 0x2da   :  { %v1999_v18 = vadd.f32 %v2784_v57, %v1991_v15  ;;  %v1992_v19 = vadd.f32 %v1987_v17, %v1913_v56  ;;  %v3428_v20 = vpop.f32.mrb[55].mxu0 }
 0x2dc   :  { %v2000_v21 = vadd.f32 %v2784_v57, %v1992_v19  ;;  %v2001_v58 = vmax.f32 %v1999_v18, 0.0 }
 0x2de   :  { %v2002_v59 = vmax.f32 %v2000_v21, 0.0 }
 0x2e0   :  { %v2003_v23 = vpack.c.bf16 %v2002_v59, %v2001_v58 }
 0x2e2   :  { %2801 = vmatmul.mubr.msk.bf16.vlgmr.msra.gmra.mrb[52].mxu1 %vm1327_vm1, %v2003_v23  ;;  %2802 = vmatmul.mubr.msk.bf16.vlgmr.msra.gmra.mrb[56].mxu0 %vm1327_vm1, %v2003_v23 }
 0x2e3   :  { %3278 = vmatpush3.bf16.msra.mxu1 %v3580_v22  ;;  %3300 = vmatpush3.bf16.msra.mxu0 %v3581_v0 }
 0x2e4   :  { %3279 = vmatprep.subr.bf16.mxu1 %v3582_v24  ;;  %3301 = vmatprep.subr.bf16.mxu0 %v3583_v60 }
 0x2e7   :  { %3280 = vmatpush3.bf16.msra.mxu1 %v3584_v25  ;;  %3302 = vmatpush3.bf16.msra.mxu0 %v3585_v26 }
 0x2e8   :  { %3281 = vmatprep.subr.bf16.mxu1 %v3586_v28  ;;  %3303 = vmatprep.subr.bf16.mxu0 %v3587_v29  ;;  %v2803_v29 = vld [vmem:[%s4624_s8] ss:$0 sm:$0xff] }
 0x2eb   :  { %3282 = vmatpush3.bf16.msra.mxu1 %v3588_v30  ;;  %3304 = vmatpush3.bf16.msra.mxu0 %v3589_v31 }
 0x2ec   :  { %3283 = vmatprep.subr.bf16.mxu1 %v3590_v61  ;;  %3305 = vmatprep.subr.bf16.mxu0 %v3591_v62 }
 0x2ef   :  { %3284 = vmatpush3.bf16.msra.mxu1 %v3592_v63  ;;  %3306 = vmatpush3.bf16.msra.mxu0 %v3593_v1 }
 0x2f0   :  { %3285 = vmatprep.subr.bf16.mxu1 %v3594_v2  ;;  %3307 = vmatprep.subr.bf16.mxu0 %v3595_v3 }
 0x2f3   :  { %3286 = vmatpush3.bf16.msra.mxu1 %v3596_v4  ;;  %3308 = vmatpush3.bf16.msra.mxu0 %v3597_v5 }
 0x2f4   :  { %3287 = vmatprep.subr.bf16.mxu1 %v3598_v6  ;;  %3309 = vmatprep.subr.bf16.mxu0 %v3599_v7 }
 0x2f7   :  { %3288 = vmatpush3.bf16.msra.mxu1 %v3600_v8  ;;  %3310 = vmatpush3.bf16.msra.mxu0 %v3601_v9 }
 0x2f8   :  { %3289 = vmatprep.subr.bf16.mxu1 %v3602_v10  ;;  %3311 = vmatprep.subr.bf16.mxu0 %v3603_v11 }
 0x2fb   :  { %3290 = vmatpush3.bf16.msra.mxu1 %v3604_v12  ;;  %3312 = vmatpush3.bf16.msra.mxu0 %v3605_v32 }
 0x2fc   :  { %3291 = vmatprep.subr.bf16.mxu1 %v3606_v33  ;;  %3313 = vmatprep.subr.bf16.mxu0 %v3607_v34 }
 0x2ff   :  { %3292 = vmatpush3.bf16.msra.mxu1 %v3608_v35  ;;  %3314 = vmatpush3.bf16.msra.mxu0 %v3609_v27 }
 0x3b5   :  { %v2159_v47 = vpop.f32.mrb[52].mxu1  ;;  %v2202_v48 = vpop.f32.mrb[56].mxu0 }
 0x3b6   :  { %v2160_v49 = vadd.f32 %v2159_v47, %v2025_v43  ;;  %v2203_v50 = vadd.f32 %v2202_v48, %v2033_v44  ;;  %v2161_v51 = vpop.f32.mrb[53].mxu1  ;;  %v2204_v52 = vpop.f32.mrb[57].mxu0 }
 0x3b7   :  { %v2162_v53 = vadd.f32 %v2161_v51, %v2029_v45  ;;  %v2205_v54 = vadd.f32 %v2204_v52, %v2037_v46  ;;  %v2163_v55 = vpop.f32.mrb[54].mxu1  ;;  %v2206_v56 = vpop.f32.mrb[58].mxu0 }
 0x3b8   :  { %v2164_v13 = vadd.f32 %v2163_v55, %v2025_v43  ;;  %v2207_v57 = vadd.f32 %v2206_v56, %v2033_v44  ;;  %v2165_v14 = vpop.f32.mrb[55].mxu1  ;;  %v2208_v15 = vpop.f32.mrb[59].mxu0  ;;  %v2211_v18 = vmax.f32 %v2160_v49, 0.0  ;;  %v2213_v19 = vmax.f32 %v2203_v50, 0.0 }
 0x3b9   :  { %v2166_v16 = vadd.f32 %v2165_v14, %v2029_v45  ;;  %v2209_v17 = vadd.f32 %v2208_v15, %v2037_v46  ;;  %v2212_v58 = vmax.f32 %v2162_v53, 0.0  ;;  %v2214_v59 = vmax.f32 %v2205_v54, 0.0 }
 0x3ba   :  { %v2215_v20 = vmax.f32 %v2164_v13, 0.0  ;;  %v2217_v21 = vmax.f32 %v2207_v57, 0.0 }
 0x3bb   :  { %v2216_v22 = vmax.f32 %v2166_v16, 0.0  ;;  %v2218_v0 = vmax.f32 %v2209_v17, 0.0 }
 0x3bc   :  { %v2219_v23 = vpack.c.bf16 %v2215_v20, %v2211_v18  ;;  %v2221_v24 = vpack.c.bf16 %v2217_v21, %v2213_v19 }
 0x3bd   :  { %v2220_v60 = vpack.c.bf16 %v2216_v22, %v2212_v58  ;;  %v2222_v25 = vpack.c.bf16 %v2218_v0, %v2214_v59 }
 0x3bf   :  { %2518 = vmatprep.mubr.bf16.mxu1 %v2220_v60  ;;  %2559 = vmatprep.mubr.bf16.mxu0 %v2222_v25 }
 0x3c0   :  { %2519 = vmatmul.mubr.bf16.vlgmr.msra.gmra.mrb[56].mxu1 %v2219_v23  ;;  %2560 = vmatmul.mubr.bf16.vlgmr.msra.gmra.mrb[60].mxu0 %v2221_v24 }
 0x493   :  { %v3293_v26 = vpop.f32.mrb[56].mxu1  ;;  %v3315_v28 = vpop.f32.mrb[60].mxu0 }
 0x494   :  { %v3294_v30 = vpop.f32.mrb[57].mxu1  ;;  %v3316_v31 = vpop.f32.mrb[61].mxu0 }
 0x495   :  { %v3295_v61 = vadd.f32 %v3294_v30, %v3293_v26  ;;  %v3317_v62 = vadd.f32 %v3316_v31, %v3315_v28  ;;  %v3296_v63 = vpop.f32.mrb[58].mxu1  ;;  %v3318_v1 = vpop.f32.mrb[62].mxu0 }
 0x496   :  { %v3297_v2 = vpop.f32.mrb[59].mxu1  ;;  %v3319_v3 = vpop.f32.mrb[63].mxu0 }
 0x497   :  { %v2521_v4 = vadd.f32 %v3295_v61, %v2803_v29  ;;  %v3298_v5 = vadd.f32 %v3297_v2, %v3296_v63  ;;  %v3320_v6 = vadd.f32 %v3319_v3, %v3318_v1 }
 0x499   :  { %v2562_v7 = vadd.f32 %v3317_v62, %v2521_v4  ;;  %v2524_v8 = vadd.f32 %v3298_v5, %v2803_v29 }
 0x49b   :  { %2568 = vst [vmem:[%s4625_s9] sm:$0xff] %v2562_v7  ;;  %v2565_v9 = vadd.f32 %v3320_v6, %v2524_v8 }
 0x49d   :  { %2569 = vst [vmem:[%s4625_s9 + $0x8] sm:$0xff] %v2565_v9 }

</bundles_post_ra>
